<compile_context>
chip_gen: v7x
topology: tpu7x:2x2x1
jax: 0.10.0
libtpu: 0.0.40
codegen_flags: <defaults>
</compile_context>

<pallas_src>
import jax
import jax.numpy as jnp
from jax.experimental import pallas as pl
from jax.experimental.pallas import tpu as pltpu

EPS = 1e-6

# ---- synthetic T5-encoder config (stands in for fooT5/config.json) ----
VOCAB = 64
D_MODEL = 32          # config.d_model
N_HEADS = 4
D_KV = 8              # inner dim = N_HEADS * D_KV = 32
D_FF = 64
N_LAYERS = 2
REL_BUCKETS = 8
REL_MAX_DIST = 16
MLP_HIDDEN = 100      # nn.Linear(d_model, 100)
MLP_PAD = 128         # zero-padded to 128 for lane-dense head matmuls (exact)


def _rmsnorm(x, w):
    # T5 LayerNorm: no mean subtraction, no bias.
    var = jnp.mean(x * x, axis=-1, keepdims=True)
    return x * jax.lax.rsqrt(var + EPS) * w


# --------------------------- fused Pallas kernel -----------------------------

def discriminate_kernel(x_ref, bias_ref, sel_ref,
                        ln1_ref, wq_ref, wk_ref, wv_ref, wo_ref,
                        ln2_ref, wi_ref, wff_ref,
                        lnf_ref, w1_ref, b1_ref, w2_ref, b2_ref,
                        o_ref):
    """Whole forward pass: T5 encoder (N_LAYERS) -> mean-pool -> MLP head."""
    B, S, D = x_ref.shape
    n_layers = wq_ref.shape[0]
    n_heads, inner = sel_ref.shape

    x = x_ref[...]                       # (B, S, D), resident for the whole kernel
    bias = bias_ref[...]                 # (B*H, S, S): rel-pos bias + attn mask (hoisted)
    sel = sel_ref[...]                   # (H, inner) head-selection 0/1 mask

    for l in range(n_layers):            # static unroll, N_LAYERS = 2
        # ---- self-attention sub-block (pre-LN, unscaled T5 attention, residual) ----
        h = _rmsnorm(x, ln1_ref[l])                      # (B, S, D)
        h2 = h.reshape(B * S, D)                         # flat (B*S, D) matmuls
        q = jnp.dot(h2, wq_ref[l], preferred_element_type=jnp.float32).reshape(B, S, inner)
        k = jnp.dot(h2, wk_ref[l], preferred_element_type=jnp.float32).reshape(B, S, inner)
        v = jnp.dot(h2, wv_ref[l], preferred_element_type=jnp.float32).reshape(B, S, inner)

        # Per-head separation via a head-selection mask (no 8-lane slicing):
        # qm[(b,h), s, c] is q with columns of other heads zeroed, so contracting over
        # the full inner dim gives exactly the per-head score.
        qm = (q[:, None, :, :] * sel[None, :, None, :]).reshape(B * n_heads, S, inner)
        vm = (v[:, None, :, :] * sel[None, :, None, :]).reshape(B * n_heads, S, inner)
        kb = jnp.broadcast_to(k[:, None, :, :],
                              (B, n_heads, S, inner)).reshape(B * n_heads, S, inner)

        # One batched score einsum + one softmax over all (batch, head) pairs.
        s = jnp.einsum('nqc,nkc->nqk', qm, kb,
                       preferred_element_type=jnp.float32)          # (B*H, S, S)
        s = s + bias
        s = s - jnp.max(s, axis=-1, keepdims=True)
        p = jnp.exp(s)
        p = p * pl.reciprocal(jnp.sum(p, axis=-1, keepdims=True), approx=True)

        ctx = jnp.einsum('nqk,nkc->nqc', p, vm,
                         preferred_element_type=jnp.float32)        # (B*H, S, inner)

        # Sum the masked per-head contexts over heads -> concatenated-head context
        # (each head only contributes to its own columns, so the sum is the concat).
        rows = []
        for b in range(B):
            acc = ctx[b * n_heads]
            for hh in range(1, n_heads):
                acc = acc + ctx[b * n_heads + hh]
            rows.append(acc)                                        # (S, inner) each
        ctx_cat = jnp.concatenate(rows, axis=0)                     # (B*S, inner)

        attn = jnp.dot(ctx_cat, wo_ref[l], preferred_element_type=jnp.float32)
        x = x + attn.reshape(B, S, D)                               # residual

        # ---- feed-forward sub-block (pre-LN, ReLU, residual) ----
        h = _rmsnorm(x, ln2_ref[l])
        f = jnp.maximum(
            jnp.dot(h.reshape(B * S, D), wi_ref[l],
                    preferred_element_type=jnp.float32), 0.0)       # (B*S, D_FF)
        x = x + jnp.dot(f, wff_ref[l],
                        preferred_element_type=jnp.float32).reshape(B, S, D)

    # ---- final encoder LN -> mean over seq -> Linear/Tanh/Linear/Sigmoid ----
    h = _rmsnorm(x, lnf_ref[...])                                   # T5 final_layer_norm
    y = jnp.mean(h, axis=1)                                         # torch.mean(feature[0], dim=1)
    z = jnp.tanh(jnp.dot(y, w1_ref[...], preferred_element_type=jnp.float32)
                 + b1_ref[...])
    logits = (jnp.dot(z, w2_ref[...], preferred_element_type=jnp.float32)
              + b2_ref[...])
    o_ref[...] = jax.nn.sigmoid(logits)                             # (B, 1)


# --------------------------- JAX glue + wrapper -------------------------------

def t5_relative_position_bias(rel_table, seq_len):
    """HF T5 bidirectional relative-position bias, shared across layers."""
    ctx = jnp.arange(seq_len)[:, None]
    mem = jnp.arange(seq_len)[None, :]
    rel = mem - ctx                                   # (S, S)
    nb = REL_BUCKETS // 2
    buckets = (rel > 0).astype(jnp.int32) * nb
    n = jnp.abs(rel)
    max_exact = nb // 2
    is_small = n < max_exact
    n_clamped = jnp.maximum(n, 1).astype(jnp.float32)
    val_if_large = max_exact + (
        jnp.log(n_clamped / max_exact)
        / jnp.log(REL_MAX_DIST / max_exact) * (nb - max_exact)
    ).astype(jnp.int32)
    val_if_large = jnp.minimum(val_if_large, nb - 1)
    buckets = buckets + jnp.where(is_small, n, val_if_large)
    values = rel_table[buckets]                       # (S, S, H)
    return jnp.transpose(values, (2, 0, 1))           # (H, S, S)


def init_params(key):
    k_emb, k_rel, k_layers, k_mlp = jax.random.split(key, 4)
    inner = N_HEADS * D_KV
    params = {
        "embed": 0.05 * jax.random.normal(k_emb, (VOCAB, D_MODEL), jnp.float32),
        "rel_bias": 0.05 * jax.random.normal(k_rel, (REL_BUCKETS, N_HEADS), jnp.float32),
        "ln_final": jnp.ones((1, D_MODEL), jnp.float32),
    }
    wq_l, wk_l, wv_l, wo_l, wi_l, wff_l = [], [], [], [], [], []
    for lk in jax.random.split(k_layers, N_LAYERS):
        ks = jax.random.split(lk, 6)
        wq_l.append(0.05 * jax.random.normal(ks[0], (D_MODEL, inner), jnp.float32))
        wk_l.append(0.05 * jax.random.normal(ks[1], (D_MODEL, inner), jnp.float32))
        wv_l.append(0.05 * jax.random.normal(ks[2], (D_MODEL, inner), jnp.float32))
        wo_l.append(0.05 * jax.random.normal(ks[3], (inner, D_MODEL), jnp.float32))
        wi_l.append(0.05 * jax.random.normal(ks[4], (D_MODEL, D_FF), jnp.float32))
        wff_l.append(0.05 * jax.random.normal(ks[5], (D_FF, D_MODEL), jnp.float32))
    params["ln1"] = jnp.ones((N_LAYERS, 1, D_MODEL), jnp.float32)
    params["ln2"] = jnp.ones((N_LAYERS, 1, D_MODEL), jnp.float32)
    params["wq"] = jnp.stack(wq_l)       # (L, D, inner)
    params["wk"] = jnp.stack(wk_l)
    params["wv"] = jnp.stack(wv_l)
    params["wo"] = jnp.stack(wo_l)       # (L, inner, D)
    params["wi"] = jnp.stack(wi_l)       # (L, D, D_FF)
    params["wff"] = jnp.stack(wff_l)     # (L, D_FF, D)

    # MLP head: 100-unit hidden, zero-padded to 128 (exactly equivalent, lane-dense).
    k1, k2 = jax.random.split(k_mlp)
    w1 = 0.05 * jax.random.normal(k1, (D_MODEL, MLP_HIDDEN), jnp.float32)
    w2 = 0.05 * jax.random.normal(k2, (MLP_HIDDEN, 1), jnp.float32)
    params["w1"] = jnp.pad(w1, ((0, 0), (0, MLP_PAD - MLP_HIDDEN)))
    params["b1"] = jnp.zeros((1, MLP_PAD), jnp.float32)
    params["w2"] = jnp.pad(w2, ((0, MLP_PAD - MLP_HIDDEN), (0, 0)))
    params["b2"] = jnp.zeros((1, 1), jnp.float32)
    return params


def discriminate_forward(params, input_ids, attention_mask):
    """Single fused pallas_call for the whole Discriminate forward pass."""
    B, S = input_ids.shape
    inner = N_HEADS * D_KV
    # glue: embedding gather + relative-position bucketing + mask folded into bias
    x = jnp.take(params["embed"], input_ids, axis=0)                  # (B, S, D)
    pos_bias = t5_relative_position_bias(params["rel_bias"], S)       # (H, S, S)
    mask_bias = (1.0 - attention_mask.astype(jnp.float32)) * -1e9     # (B, S)
    bias = (pos_bias[None, :, :, :]
            + mask_bias[:, None, None, :]).reshape(B * N_HEADS, S, S)
    # head-selection mask: column c belongs to head c // D_KV
    sel = (jnp.arange(inner)[None, :] // D_KV
           == jnp.arange(N_HEADS)[:, None]).astype(jnp.float32)       # (H, inner)

    vmem = pl.BlockSpec(memory_space=pltpu.MemorySpace.VMEM)
    return pl.pallas_call(
        discriminate_kernel,
        out_shape=jax.ShapeDtypeStruct((B, 1), jnp.float32),
        in_specs=[vmem] * 16,
        out_specs=vmem,
    )(x, bias, sel,
      params["ln1"], params["wq"], params["wk"], params["wv"], params["wo"],
      params["ln2"], params["wi"], params["wff"],
      params["ln_final"], params["w1"], params["b1"], params["w2"], params["b2"])


# --------------------------- pure-JAX reference --------------------------------

def reference_forward(params, input_ids, attention_mask):
    B, S = input_ids.shape
    x = jnp.take(params["embed"], input_ids, axis=0)
    pos_bias = t5_relative_position_bias(params["rel_bias"], S)
    mask_bias = (1.0 - attention_mask.astype(jnp.float32)) * -1e9
    bias = pos_bias[None] + mask_bias[:, None, None, :]               # (B, H, S, S)
    for l in range(N_LAYERS):
        h = _rmsnorm(x, params["ln1"][l])
        q = h @ params["wq"][l]
        k = h @ params["wk"][l]
        v = h @ params["wv"][l]
        qh = q.reshape(B, S, N_HEADS, D_KV).transpose(0, 2, 1, 3)
        kh = k.reshape(B, S, N_HEADS, D_KV).transpose(0, 2, 1, 3)
        vh = v.reshape(B, S, N_HEADS, D_KV).transpose(0, 2, 1, 3)
        s = jnp.einsum("bhqe,bhke->bhqk", qh, kh) + bias              # unscaled (T5)
        p = jax.nn.softmax(s, axis=-1)
        ctx = jnp.einsum("bhqk,bhke->bhqe", p, vh)
        ctx = ctx.transpose(0, 2, 1, 3).reshape(B, S, -1)
        x = x + ctx @ params["wo"][l]
        h = _rmsnorm(x, params["ln2"][l])
        x = x + jnp.maximum(h @ params["wi"][l], 0.0) @ params["wff"][l]
    h = _rmsnorm(x, params["ln_final"])
    y = jnp.mean(h, axis=1)
    z = jnp.tanh(y @ params["w1"] + params["b1"])
    return jax.nn.sigmoid(z @ params["w2"] + params["b2"])


# --------------------------- main ----------------------------------------------

if __name__ == "__main__":
    key = jax.random.PRNGKey(0)
    kp, kid = jax.random.split(key)
    params = init_params(kp)

    B, S = 2, 8
    input_ids = jax.random.randint(kid, (B, S), 0, VOCAB, dtype=jnp.int32)
    attention_mask = jnp.array([[1, 1, 1, 1, 1, 1, 1, 1],
                                [1, 1, 1, 1, 1, 1, 0, 0]], dtype=jnp.int32)

    y_pred = discriminate_forward(params, input_ids, attention_mask)
    y_pred = jax.block_until_ready(y_pred)
    y_ref = reference_forward(params, input_ids, attention_mask)

    assert y_pred.shape == (B, 1), y_pred.shape
    assert bool(jnp.all(jnp.isfinite(y_pred)))
    assert bool(jnp.all((y_pred > 0.0) & (y_pred < 1.0)))             # sigmoid range
    # approx-reciprocal softmax introduces ~1e-3-level differences at most
    assert bool(jnp.allclose(y_pred, y_ref, atol=1e-2, rtol=1e-2)), (y_pred, y_ref)
    print("KERNEL_OK")
</pallas_src>

<mosaic_0001>
module attributes {stable_mosaic.version = 11 : i64} {
  func.func @discriminate_kernel(%arg0: memref<2x8x32xf32, #tpu.memory_space<vmem>>, %arg1: memref<8x8x8xf32, #tpu.memory_space<vmem>>, %arg2: memref<4x32xf32, #tpu.memory_space<vmem>>, %arg3: memref<2x1x32xf32, #tpu.memory_space<vmem>>, %arg4: memref<2x32x32xf32, #tpu.memory_space<vmem>>, %arg5: memref<2x32x32xf32, #tpu.memory_space<vmem>>, %arg6: memref<2x32x32xf32, #tpu.memory_space<vmem>>, %arg7: memref<2x32x32xf32, #tpu.memory_space<vmem>>, %arg8: memref<2x1x32xf32, #tpu.memory_space<vmem>>, %arg9: memref<2x32x64xf32, #tpu.memory_space<vmem>>, %arg10: memref<2x64x32xf32, #tpu.memory_space<vmem>>, %arg11: memref<1x32xf32, #tpu.memory_space<vmem>>, %arg12: memref<32x128xf32, #tpu.memory_space<vmem>>, %arg13: memref<1x128xf32, #tpu.memory_space<vmem>>, %arg14: memref<128x1xf32, #tpu.memory_space<vmem>>, %arg15: memref<1x1xf32, #tpu.memory_space<vmem>>, %arg16: memref<2x1xf32, #tpu.memory_space<vmem>>) attributes {dimension_semantics = [], scalar_prefetch = 0 : i64, scratch_operands = 0 : i64, tpu.core_type = #tpu.core_type<tc>} {
    %c0 = arith.constant 0 : index
    %c0_0 = arith.constant 0 : index
    %c0_1 = arith.constant 0 : index
    %0 = vector.load %arg0[%c0, %c0_0, %c0_1] : memref<2x8x32xf32, #tpu.memory_space<vmem>>, vector<2x8x32xf32>
    %c0_2 = arith.constant 0 : index
    %c0_3 = arith.constant 0 : index
    %c0_4 = arith.constant 0 : index
    %1 = vector.load %arg1[%c0_2, %c0_3, %c0_4] : memref<8x8x8xf32, #tpu.memory_space<vmem>>, vector<8x8x8xf32>
    %c0_5 = arith.constant 0 : index
    %c0_6 = arith.constant 0 : index
    %2 = vector.load %arg2[%c0_5, %c0_6] : memref<4x32xf32, #tpu.memory_space<vmem>>, vector<4x32xf32>
    %c0_7 = arith.constant 0 : index
    %c0_8 = arith.constant 0 : index
    %c0_9 = arith.constant 0 : index
    %3 = vector.load %arg3[%c0_7, %c0_8, %c0_9] : memref<2x1x32xf32, #tpu.memory_space<vmem>>, vector<1x1x32xf32>
    %4 = vector.shape_cast %3 : vector<1x1x32xf32> to vector<1x32xf32>
    %5 = arith.mulf %0, %0 : vector<2x8x32xf32>
    %cst = arith.constant dense<0.000000e+00> : vector<2x8xf32>
    %6 = vector.multi_reduction <add>, %5, %cst [2] : vector<2x8x32xf32> to vector<2x8xf32>
    %7 = vector.shape_cast %6 : vector<2x8xf32> to vector<2x8x1xf32>
    %cst_10 = arith.constant 3.200000e+01 : f32
    %8 = vector.broadcast %cst_10 : f32 to vector<2x8x1xf32>
    %9 = arith.divf %7, %8 : vector<2x8x1xf32>
    %cst_11 = arith.constant 9.99999997E-7 : f32
    %10 = vector.broadcast %cst_11 : f32 to vector<2x8x1xf32>
    %11 = arith.addf %9, %10 : vector<2x8x1xf32>
    %12 = math.rsqrt %11 : vector<2x8x1xf32>
    %13 = vector.broadcast %12 : vector<2x8x1xf32> to vector<2x8x32xf32>
    %14 = arith.mulf %0, %13 : vector<2x8x32xf32>
    %15 = vector.shape_cast %4 : vector<1x32xf32> to vector<1x1x32xf32>
    %16 = vector.broadcast %15 : vector<1x1x32xf32> to vector<2x8x32xf32>
    %17 = arith.mulf %14, %16 : vector<2x8x32xf32>
    %18 = vector.shape_cast %17 : vector<2x8x32xf32> to vector<16x32xf32>
    %c0_12 = arith.constant 0 : index
    %c0_13 = arith.constant 0 : index
    %c0_14 = arith.constant 0 : index
    %19 = vector.load %arg4[%c0_12, %c0_13, %c0_14] : memref<2x32x32xf32, #tpu.memory_space<vmem>>, vector<1x32x32xf32>
    %20 = vector.shape_cast %19 : vector<1x32x32xf32> to vector<32x32xf32>
    %cst_15 = arith.constant dense<0.000000e+00> : vector<16x32xf32>
    %21 = tpu.matmul %18, %20, %cst_15 {dimension_numbers = #tpu.dot_dimension_numbers<[1], [0], [0], [1], [0, 0, 1, 1], [], []>} : vector<16x32xf32>, vector<32x32xf32>, vector<16x32xf32> -> vector<16x32xf32>
    %22 = vector.shape_cast %21 : vector<16x32xf32> to vector<2x8x32xf32>
    %c0_16 = arith.constant 0 : index
    %c0_17 = arith.constant 0 : index
    %c0_18 = arith.constant 0 : index
    %23 = vector.load %arg5[%c0_16, %c0_17, %c0_18] : memref<2x32x32xf32, #tpu.memory_space<vmem>>, vector<1x32x32xf32>
    %24 = vector.shape_cast %23 : vector<1x32x32xf32> to vector<32x32xf32>
    %cst_19 = arith.constant dense<0.000000e+00> : vector<16x32xf32>
    %25 = tpu.matmul %18, %24, %cst_19 {dimension_numbers = #tpu.dot_dimension_numbers<[1], [0], [0], [1], [0, 0, 1, 1], [], []>} : vector<16x32xf32>, vector<32x32xf32>, vector<16x32xf32> -> vector<16x32xf32>
    %26 = vector.shape_cast %25 : vector<16x32xf32> to vector<2x8x32xf32>
    %c0_20 = arith.constant 0 : index
    %c0_21 = arith.constant 0 : index
    %c0_22 = arith.constant 0 : index
    %27 = vector.load %arg6[%c0_20, %c0_21, %c0_22] : memref<2x32x32xf32, #tpu.memory_space<vmem>>, vector<1x32x32xf32>
    %28 = vector.shape_cast %27 : vector<1x32x32xf32> to vector<32x32xf32>
    %cst_23 = arith.constant dense<0.000000e+00> : vector<16x32xf32>
    %29 = tpu.matmul %18, %28, %cst_23 {dimension_numbers = #tpu.dot_dimension_numbers<[1], [0], [0], [1], [0, 0, 1, 1], [], []>} : vector<16x32xf32>, vector<32x32xf32>, vector<16x32xf32> -> vector<16x32xf32>
    %30 = vector.shape_cast %29 : vector<16x32xf32> to vector<2x8x32xf32>
    %31 = vector.shape_cast %22 : vector<2x8x32xf32> to vector<2x1x8x32xf32>
    %32 = vector.shape_cast %2 : vector<4x32xf32> to vector<1x4x1x32xf32>
    %33 = vector.broadcast %31 : vector<2x1x8x32xf32> to vector<2x4x8x32xf32>
    %34 = vector.broadcast %32 : vector<1x4x1x32xf32> to vector<2x4x8x32xf32>
    %35 = arith.mulf %33, %34 : vector<2x4x8x32xf32>
    %36 = vector.shape_cast %35 : vector<2x4x8x32xf32> to vector<8x8x32xf32>
    %37 = vector.shape_cast %30 : vector<2x8x32xf32> to vector<2x1x8x32xf32>
    %38 = vector.shape_cast %2 : vector<4x32xf32> to vector<1x4x1x32xf32>
    %39 = vector.broadcast %37 : vector<2x1x8x32xf32> to vector<2x4x8x32xf32>
    %40 = vector.broadcast %38 : vector<1x4x1x32xf32> to vector<2x4x8x32xf32>
    %41 = arith.mulf %39, %40 : vector<2x4x8x32xf32>
    %42 = vector.shape_cast %41 : vector<2x4x8x32xf32> to vector<8x8x32xf32>
    %43 = vector.shape_cast %26 : vector<2x8x32xf32> to vector<2x1x8x32xf32>
    %44 = vector.shape_cast %43 : vector<2x1x8x32xf32> to vector<2x1x8x32xf32>
    %45 = vector.broadcast %44 : vector<2x1x8x32xf32> to vector<2x4x8x32xf32>
    %46 = vector.shape_cast %45 : vector<2x4x8x32xf32> to vector<8x8x32xf32>
    "tpu.trace_start"() <{level = 10 : i32, message = "nqc,nkc->nqk"}> : () -> ()
    %cst_24 = arith.constant dense<0.000000e+00> : vector<8x8x8xf32>
    %47 = tpu.matmul %36, %46, %cst_24 {dimension_numbers = #tpu.dot_dimension_numbers<[2], [2], [1], [1], [0, 0, 0, 1, 1, 1], [0], [0]>} : vector<8x8x32xf32>, vector<8x8x32xf32>, vector<8x8x8xf32> -> vector<8x8x8xf32>
    "tpu.trace_stop"() : () -> ()
    %48 = arith.addf %47, %1 : vector<8x8x8xf32>
    %cst_25 = arith.constant dense<0xFF800000> : vector<8x8xf32>
    %49 = vector.multi_reduction <maximumf>, %48, %cst_25 [2] : vector<8x8x8xf32> to vector<8x8xf32>
    %50 = vector.shape_cast %49 : vector<8x8xf32> to vector<8x8x1xf32>
    %51 = vector.broadcast %50 : vector<8x8x1xf32> to vector<8x8x8xf32>
    %52 = arith.subf %48, %51 : vector<8x8x8xf32>
    %53 = math.exp %52 : vector<8x8x8xf32>
    %cst_26 = arith.constant dense<0.000000e+00> : vector<8x8xf32>
    %54 = vector.multi_reduction <add>, %53, %cst_26 [2] : vector<8x8x8xf32> to vector<8x8xf32>
    %55 = vector.shape_cast %54 : vector<8x8xf32> to vector<8x8x1xf32>
    %56 = tpu.reciprocal %55 {approx = true} : vector<8x8x1xf32> -> vector<8x8x1xf32>
    %57 = vector.broadcast %56 : vector<8x8x1xf32> to vector<8x8x8xf32>
    %58 = arith.mulf %53, %57 : vector<8x8x8xf32>
    "tpu.trace_start"() <{level = 10 : i32, message = "nqk,nkc->nqc"}> : () -> ()
    %cst_27 = arith.constant dense<0.000000e+00> : vector<8x8x32xf32>
    %59 = tpu.matmul %58, %42, %cst_27 {dimension_numbers = #tpu.dot_dimension_numbers<[2], [1], [1], [2], [0, 0, 0, 1, 1, 2], [0], [0]>} : vector<8x8x8xf32>, vector<8x8x32xf32>, vector<8x8x32xf32> -> vector<8x8x32xf32>
    "tpu.trace_stop"() : () -> ()
    %60 = vector.extract_strided_slice %59 {offsets = [0, 0, 0], sizes = [1, 8, 32], strides = [1, 1, 1]} : vector<8x8x32xf32> to vector<1x8x32xf32>
    %61 = vector.shape_cast %60 : vector<1x8x32xf32> to vector<8x32xf32>
    %62 = vector.extract_strided_slice %59 {offsets = [1, 0, 0], sizes = [1, 8, 32], strides = [1, 1, 1]} : vector<8x8x32xf32> to vector<1x8x32xf32>
    %63 = vector.shape_cast %62 : vector<1x8x32xf32> to vector<8x32xf32>
    %64 = arith.addf %61, %63 : vector<8x32xf32>
    %65 = vector.extract_strided_slice %59 {offsets = [2, 0, 0], sizes = [1, 8, 32], strides = [1, 1, 1]} : vector<8x8x32xf32> to vector<1x8x32xf32>
    %66 = vector.shape_cast %65 : vector<1x8x32xf32> to vector<8x32xf32>
    %67 = arith.addf %64, %66 : vector<8x32xf32>
    %68 = vector.extract_strided_slice %59 {offsets = [3, 0, 0], sizes = [1, 8, 32], strides = [1, 1, 1]} : vector<8x8x32xf32> to vector<1x8x32xf32>
    %69 = vector.shape_cast %68 : vector<1x8x32xf32> to vector<8x32xf32>
    %70 = arith.addf %67, %69 : vector<8x32xf32>
    %71 = vector.extract_strided_slice %59 {offsets = [4, 0, 0], sizes = [1, 8, 32], strides = [1, 1, 1]} : vector<8x8x32xf32> to vector<1x8x32xf32>
    %72 = vector.shape_cast %71 : vector<1x8x32xf32> to vector<8x32xf32>
    %73 = vector.extract_strided_slice %59 {offsets = [5, 0, 0], sizes = [1, 8, 32], strides = [1, 1, 1]} : vector<8x8x32xf32> to vector<1x8x32xf32>
    %74 = vector.shape_cast %73 : vector<1x8x32xf32> to vector<8x32xf32>
    %75 = arith.addf %72, %74 : vector<8x32xf32>
    %76 = vector.extract_strided_slice %59 {offsets = [6, 0, 0], sizes = [1, 8, 32], strides = [1, 1, 1]} : vector<8x8x32xf32> to vector<1x8x32xf32>
    %77 = vector.shape_cast %76 : vector<1x8x32xf32> to vector<8x32xf32>
    %78 = arith.addf %75, %77 : vector<8x32xf32>
    %79 = vector.extract_strided_slice %59 {offsets = [7, 0, 0], sizes = [1, 8, 32], strides = [1, 1, 1]} : vector<8x8x32xf32> to vector<1x8x32xf32>
    %80 = vector.shape_cast %79 : vector<1x8x32xf32> to vector<8x32xf32>
    %81 = arith.addf %78, %80 : vector<8x32xf32>
    %82 = tpu.concatenate %70, %81 in 0 : vector<8x32xf32>, vector<8x32xf32> -> vector<16x32xf32>
    %c0_28 = arith.constant 0 : index
    %c0_29 = arith.constant 0 : index
    %c0_30 = arith.constant 0 : index
    %83 = vector.load %arg7[%c0_28, %c0_29, %c0_30] : memref<2x32x32xf32, #tpu.memory_space<vmem>>, vector<1x32x32xf32>
    %84 = vector.shape_cast %83 : vector<1x32x32xf32> to vector<32x32xf32>
    %cst_31 = arith.constant dense<0.000000e+00> : vector<16x32xf32>
    %85 = tpu.matmul %82, %84, %cst_31 {dimension_numbers = #tpu.dot_dimension_numbers<[1], [0], [0], [1], [0, 0, 1, 1], [], []>} : vector<16x32xf32>, vector<32x32xf32>, vector<16x32xf32> -> vector<16x32xf32>
    %86 = vector.shape_cast %85 : vector<16x32xf32> to vector<2x8x32xf32>
    %87 = arith.addf %0, %86 : vector<2x8x32xf32>
    %c0_32 = arith.constant 0 : index
    %c0_33 = arith.constant 0 : index
    %c0_34 = arith.constant 0 : index
    %88 = vector.load %arg8[%c0_32, %c0_33, %c0_34] : memref<2x1x32xf32, #tpu.memory_space<vmem>>, vector<1x1x32xf32>
    %89 = vector.shape_cast %88 : vector<1x1x32xf32> to vector<1x32xf32>
    %90 = arith.mulf %87, %87 : vector<2x8x32xf32>
    %cst_35 = arith.constant dense<0.000000e+00> : vector<2x8xf32>
    %91 = vector.multi_reduction <add>, %90, %cst_35 [2] : vector<2x8x32xf32> to vector<2x8xf32>
    %92 = vector.shape_cast %91 : vector<2x8xf32> to vector<2x8x1xf32>
    %cst_36 = arith.constant 3.200000e+01 : f32
    %93 = vector.broadcast %cst_36 : f32 to vector<2x8x1xf32>
    %94 = arith.divf %92, %93 : vector<2x8x1xf32>
    %cst_37 = arith.constant 9.99999997E-7 : f32
    %95 = vector.broadcast %cst_37 : f32 to vector<2x8x1xf32>
    %96 = arith.addf %94, %95 : vector<2x8x1xf32>
    %97 = math.rsqrt %96 : vector<2x8x1xf32>
    %98 = vector.broadcast %97 : vector<2x8x1xf32> to vector<2x8x32xf32>
    %99 = arith.mulf %87, %98 : vector<2x8x32xf32>
    %100 = vector.shape_cast %89 : vector<1x32xf32> to vector<1x1x32xf32>
    %101 = vector.broadcast %100 : vector<1x1x32xf32> to vector<2x8x32xf32>
    %102 = arith.mulf %99, %101 : vector<2x8x32xf32>
    %103 = vector.shape_cast %102 : vector<2x8x32xf32> to vector<16x32xf32>
    %c0_38 = arith.constant 0 : index
    %c0_39 = arith.constant 0 : index
    %c0_40 = arith.constant 0 : index
    %104 = vector.load %arg9[%c0_38, %c0_39, %c0_40] : memref<2x32x64xf32, #tpu.memory_space<vmem>>, vector<1x32x64xf32>
    %105 = vector.shape_cast %104 : vector<1x32x64xf32> to vector<32x64xf32>
    %cst_41 = arith.constant dense<0.000000e+00> : vector<16x64xf32>
    %106 = tpu.matmul %103, %105, %cst_41 {dimension_numbers = #tpu.dot_dimension_numbers<[1], [0], [0], [1], [0, 0, 1, 1], [], []>} : vector<16x32xf32>, vector<32x64xf32>, vector<16x64xf32> -> vector<16x64xf32>
    %cst_42 = arith.constant 0.000000e+00 : f32
    %107 = vector.broadcast %cst_42 : f32 to vector<16x64xf32>
    %108 = arith.maximumf %106, %107 : vector<16x64xf32>
    %c0_43 = arith.constant 0 : index
    %c0_44 = arith.constant 0 : index
    %c0_45 = arith.constant 0 : index
    %109 = vector.load %arg10[%c0_43, %c0_44, %c0_45] : memref<2x64x32xf32, #tpu.memory_space<vmem>>, vector<1x64x32xf32>
    %110 = vector.shape_cast %109 : vector<1x64x32xf32> to vector<64x32xf32>
    %cst_46 = arith.constant dense<0.000000e+00> : vector<16x32xf32>
    %111 = tpu.matmul %108, %110, %cst_46 {dimension_numbers = #tpu.dot_dimension_numbers<[1], [0], [0], [1], [0, 0, 1, 1], [], []>} : vector<16x64xf32>, vector<64x32xf32>, vector<16x32xf32> -> vector<16x32xf32>
    %112 = vector.shape_cast %111 : vector<16x32xf32> to vector<2x8x32xf32>
    %113 = arith.addf %87, %112 : vector<2x8x32xf32>
    %c1 = arith.constant 1 : index
    %c0_47 = arith.constant 0 : index
    %c0_48 = arith.constant 0 : index
    %114 = vector.load %arg3[%c1, %c0_47, %c0_48] : memref<2x1x32xf32, #tpu.memory_space<vmem>>, vector<1x1x32xf32>
    %115 = vector.shape_cast %114 : vector<1x1x32xf32> to vector<1x32xf32>
    %116 = arith.mulf %113, %113 : vector<2x8x32xf32>
    %cst_49 = arith.constant dense<0.000000e+00> : vector<2x8xf32>
    %117 = vector.multi_reduction <add>, %116, %cst_49 [2] : vector<2x8x32xf32> to vector<2x8xf32>
    %118 = vector.shape_cast %117 : vector<2x8xf32> to vector<2x8x1xf32>
    %cst_50 = arith.constant 3.200000e+01 : f32
    %119 = vector.broadcast %cst_50 : f32 to vector<2x8x1xf32>
    %120 = arith.divf %118, %119 : vector<2x8x1xf32>
    %cst_51 = arith.constant 9.99999997E-7 : f32
    %121 = vector.broadcast %cst_51 : f32 to vector<2x8x1xf32>
    %122 = arith.addf %120, %121 : vector<2x8x1xf32>
    %123 = math.rsqrt %122 : vector<2x8x1xf32>
    %124 = vector.broadcast %123 : vector<2x8x1xf32> to vector<2x8x32xf32>
    %125 = arith.mulf %113, %124 : vector<2x8x32xf32>
    %126 = vector.shape_cast %115 : vector<1x32xf32> to vector<1x1x32xf32>
    %127 = vector.broadcast %126 : vector<1x1x32xf32> to vector<2x8x32xf32>
    %128 = arith.mulf %125, %127 : vector<2x8x32xf32>
    %129 = vector.shape_cast %128 : vector<2x8x32xf32> to vector<16x32xf32>
    %c1_52 = arith.constant 1 : index
    %c0_53 = arith.constant 0 : index
    %c0_54 = arith.constant 0 : index
    %130 = vector.load %arg4[%c1_52, %c0_53, %c0_54] : memref<2x32x32xf32, #tpu.memory_space<vmem>>, vector<1x32x32xf32>
    %131 = vector.shape_cast %130 : vector<1x32x32xf32> to vector<32x32xf32>
    %cst_55 = arith.constant dense<0.000000e+00> : vector<16x32xf32>
    %132 = tpu.matmul %129, %131, %cst_55 {dimension_numbers = #tpu.dot_dimension_numbers<[1], [0], [0], [1], [0, 0, 1, 1], [], []>} : vector<16x32xf32>, vector<32x32xf32>, vector<16x32xf32> -> vector<16x32xf32>
    %133 = vector.shape_cast %132 : vector<16x32xf32> to vector<2x8x32xf32>
    %c1_56 = arith.constant 1 : index
    %c0_57 = arith.constant 0 : index
    %c0_58 = arith.constant 0 : index
    %134 = vector.load %arg5[%c1_56, %c0_57, %c0_58] : memref<2x32x32xf32, #tpu.memory_space<vmem>>, vector<1x32x32xf32>
    %135 = vector.shape_cast %134 : vector<1x32x32xf32> to vector<32x32xf32>
    %cst_59 = arith.constant dense<0.000000e+00> : vector<16x32xf32>
    %136 = tpu.matmul %129, %135, %cst_59 {dimension_numbers = #tpu.dot_dimension_numbers<[1], [0], [0], [1], [0, 0, 1, 1], [], []>} : vector<16x32xf32>, vector<32x32xf32>, vector<16x32xf32> -> vector<16x32xf32>
    %137 = vector.shape_cast %136 : vector<16x32xf32> to vector<2x8x32xf32>
    %c1_60 = arith.constant 1 : index
    %c0_61 = arith.constant 0 : index
    %c0_62 = arith.constant 0 : index
    %138 = vector.load %arg6[%c1_60, %c0_61, %c0_62] : memref<2x32x32xf32, #tpu.memory_space<vmem>>, vector<1x32x32xf32>
    %139 = vector.shape_cast %138 : vector<1x32x32xf32> to vector<32x32xf32>
    %cst_63 = arith.constant dense<0.000000e+00> : vector<16x32xf32>
    %140 = tpu.matmul %129, %139, %cst_63 {dimension_numbers = #tpu.dot_dimension_numbers<[1], [0], [0], [1], [0, 0, 1, 1], [], []>} : vector<16x32xf32>, vector<32x32xf32>, vector<16x32xf32> -> vector<16x32xf32>
    %141 = vector.shape_cast %140 : vector<16x32xf32> to vector<2x8x32xf32>
    %142 = vector.shape_cast %133 : vector<2x8x32xf32> to vector<2x1x8x32xf32>
    %143 = vector.shape_cast %2 : vector<4x32xf32> to vector<1x4x1x32xf32>
    %144 = vector.broadcast %142 : vector<2x1x8x32xf32> to vector<2x4x8x32xf32>
    %145 = vector.broadcast %143 : vector<1x4x1x32xf32> to vector<2x4x8x32xf32>
    %146 = arith.mulf %144, %145 : vector<2x4x8x32xf32>
    %147 = vector.shape_cast %146 : vector<2x4x8x32xf32> to vector<8x8x32xf32>
    %148 = vector.shape_cast %141 : vector<2x8x32xf32> to vector<2x1x8x32xf32>
    %149 = vector.shape_cast %2 : vector<4x32xf32> to vector<1x4x1x32xf32>
    %150 = vector.broadcast %148 : vector<2x1x8x32xf32> to vector<2x4x8x32xf32>
    %151 = vector.broadcast %149 : vector<1x4x1x32xf32> to vector<2x4x8x32xf32>
    %152 = arith.mulf %150, %151 : vector<2x4x8x32xf32>
    %153 = vector.shape_cast %152 : vector<2x4x8x32xf32> to vector<8x8x32xf32>
    %154 = vector.shape_cast %137 : vector<2x8x32xf32> to vector<2x1x8x32xf32>
    %155 = vector.shape_cast %154 : vector<2x1x8x32xf32> to vector<2x1x8x32xf32>
    %156 = vector.broadcast %155 : vector<2x1x8x32xf32> to vector<2x4x8x32xf32>
    %157 = vector.shape_cast %156 : vector<2x4x8x32xf32> to vector<8x8x32xf32>
    "tpu.trace_start"() <{level = 10 : i32, message = "nqc,nkc->nqk"}> : () -> ()
    %cst_64 = arith.constant dense<0.000000e+00> : vector<8x8x8xf32>
    %158 = tpu.matmul %147, %157, %cst_64 {dimension_numbers = #tpu.dot_dimension_numbers<[2], [2], [1], [1], [0, 0, 0, 1, 1, 1], [0], [0]>} : vector<8x8x32xf32>, vector<8x8x32xf32>, vector<8x8x8xf32> -> vector<8x8x8xf32>
    "tpu.trace_stop"() : () -> ()
    %159 = arith.addf %158, %1 : vector<8x8x8xf32>
    %cst_65 = arith.constant dense<0xFF800000> : vector<8x8xf32>
    %160 = vector.multi_reduction <maximumf>, %159, %cst_65 [2] : vector<8x8x8xf32> to vector<8x8xf32>
    %161 = vector.shape_cast %160 : vector<8x8xf32> to vector<8x8x1xf32>
    %162 = vector.broadcast %161 : vector<8x8x1xf32> to vector<8x8x8xf32>
    %163 = arith.subf %159, %162 : vector<8x8x8xf32>
    %164 = math.exp %163 : vector<8x8x8xf32>
    %cst_66 = arith.constant dense<0.000000e+00> : vector<8x8xf32>
    %165 = vector.multi_reduction <add>, %164, %cst_66 [2] : vector<8x8x8xf32> to vector<8x8xf32>
    %166 = vector.shape_cast %165 : vector<8x8xf32> to vector<8x8x1xf32>
    %167 = tpu.reciprocal %166 {approx = true} : vector<8x8x1xf32> -> vector<8x8x1xf32>
    %168 = vector.broadcast %167 : vector<8x8x1xf32> to vector<8x8x8xf32>
    %169 = arith.mulf %164, %168 : vector<8x8x8xf32>
    "tpu.trace_start"() <{level = 10 : i32, message = "nqk,nkc->nqc"}> : () -> ()
    %cst_67 = arith.constant dense<0.000000e+00> : vector<8x8x32xf32>
    %170 = tpu.matmul %169, %153, %cst_67 {dimension_numbers = #tpu.dot_dimension_numbers<[2], [1], [1], [2], [0, 0, 0, 1, 1, 2], [0], [0]>} : vector<8x8x8xf32>, vector<8x8x32xf32>, vector<8x8x32xf32> -> vector<8x8x32xf32>
    "tpu.trace_stop"() : () -> ()
    %171 = vector.extract_strided_slice %170 {offsets = [0, 0, 0], sizes = [1, 8, 32], strides = [1, 1, 1]} : vector<8x8x32xf32> to vector<1x8x32xf32>
    %172 = vector.shape_cast %171 : vector<1x8x32xf32> to vector<8x32xf32>
    %173 = vector.extract_strided_slice %170 {offsets = [1, 0, 0], sizes = [1, 8, 32], strides = [1, 1, 1]} : vector<8x8x32xf32> to vector<1x8x32xf32>
    %174 = vector.shape_cast %173 : vector<1x8x32xf32> to vector<8x32xf32>
    %175 = arith.addf %172, %174 : vector<8x32xf32>
    %176 = vector.extract_strided_slice %170 {offsets = [2, 0, 0], sizes = [1, 8, 32], strides = [1, 1, 1]} : vector<8x8x32xf32> to vector<1x8x32xf32>
    %177 = vector.shape_cast %176 : vector<1x8x32xf32> to vector<8x32xf32>
    %178 = arith.addf %175, %177 : vector<8x32xf32>
    %179 = vector.extract_strided_slice %170 {offsets = [3, 0, 0], sizes = [1, 8, 32], strides = [1, 1, 1]} : vector<8x8x32xf32> to vector<1x8x32xf32>
    %180 = vector.shape_cast %179 : vector<1x8x32xf32> to vector<8x32xf32>
    %181 = arith.addf %178, %180 : vector<8x32xf32>
    %182 = vector.extract_strided_slice %170 {offsets = [4, 0, 0], sizes = [1, 8, 32], strides = [1, 1, 1]} : vector<8x8x32xf32> to vector<1x8x32xf32>
    %183 = vector.shape_cast %182 : vector<1x8x32xf32> to vector<8x32xf32>
    %184 = vector.extract_strided_slice %170 {offsets = [5, 0, 0], sizes = [1, 8, 32], strides = [1, 1, 1]} : vector<8x8x32xf32> to vector<1x8x32xf32>
    %185 = vector.shape_cast %184 : vector<1x8x32xf32> to vector<8x32xf32>
    %186 = arith.addf %183, %185 : vector<8x32xf32>
    %187 = vector.extract_strided_slice %170 {offsets = [6, 0, 0], sizes = [1, 8, 32], strides = [1, 1, 1]} : vector<8x8x32xf32> to vector<1x8x32xf32>
    %188 = vector.shape_cast %187 : vector<1x8x32xf32> to vector<8x32xf32>
    %189 = arith.addf %186, %188 : vector<8x32xf32>
    %190 = vector.extract_strided_slice %170 {offsets = [7, 0, 0], sizes = [1, 8, 32], strides = [1, 1, 1]} : vector<8x8x32xf32> to vector<1x8x32xf32>
    %191 = vector.shape_cast %190 : vector<1x8x32xf32> to vector<8x32xf32>
    %192 = arith.addf %189, %191 : vector<8x32xf32>
    %193 = tpu.concatenate %181, %192 in 0 : vector<8x32xf32>, vector<8x32xf32> -> vector<16x32xf32>
    %c1_68 = arith.constant 1 : index
    %c0_69 = arith.constant 0 : index
    %c0_70 = arith.constant 0 : index
    %194 = vector.load %arg7[%c1_68, %c0_69, %c0_70] : memref<2x32x32xf32, #tpu.memory_space<vmem>>, vector<1x32x32xf32>
    %195 = vector.shape_cast %194 : vector<1x32x32xf32> to vector<32x32xf32>
    %cst_71 = arith.constant dense<0.000000e+00> : vector<16x32xf32>
    %196 = tpu.matmul %193, %195, %cst_71 {dimension_numbers = #tpu.dot_dimension_numbers<[1], [0], [0], [1], [0, 0, 1, 1], [], []>} : vector<16x32xf32>, vector<32x32xf32>, vector<16x32xf32> -> vector<16x32xf32>
    %197 = vector.shape_cast %196 : vector<16x32xf32> to vector<2x8x32xf32>
    %198 = arith.addf %113, %197 : vector<2x8x32xf32>
    %c1_72 = arith.constant 1 : index
    %c0_73 = arith.constant 0 : index
    %c0_74 = arith.constant 0 : index
    %199 = vector.load %arg8[%c1_72, %c0_73, %c0_74] : memref<2x1x32xf32, #tpu.memory_space<vmem>>, vector<1x1x32xf32>
    %200 = vector.shape_cast %199 : vector<1x1x32xf32> to vector<1x32xf32>
    %201 = arith.mulf %198, %198 : vector<2x8x32xf32>
    %cst_75 = arith.constant dense<0.000000e+00> : vector<2x8xf32>
    %202 = vector.multi_reduction <add>, %201, %cst_75 [2] : vector<2x8x32xf32> to vector<2x8xf32>
    %203 = vector.shape_cast %202 : vector<2x8xf32> to vector<2x8x1xf32>
    %cst_76 = arith.constant 3.200000e+01 : f32
    %204 = vector.broadcast %cst_76 : f32 to vector<2x8x1xf32>
    %205 = arith.divf %203, %204 : vector<2x8x1xf32>
    %cst_77 = arith.constant 9.99999997E-7 : f32
    %206 = vector.broadcast %cst_77 : f32 to vector<2x8x1xf32>
    %207 = arith.addf %205, %206 : vector<2x8x1xf32>
    %208 = math.rsqrt %207 : vector<2x8x1xf32>
    %209 = vector.broadcast %208 : vector<2x8x1xf32> to vector<2x8x32xf32>
    %210 = arith.mulf %198, %209 : vector<2x8x32xf32>
    %211 = vector.shape_cast %200 : vector<1x32xf32> to vector<1x1x32xf32>
    %212 = vector.broadcast %211 : vector<1x1x32xf32> to vector<2x8x32xf32>
    %213 = arith.mulf %210, %212 : vector<2x8x32xf32>
    %214 = vector.shape_cast %213 : vector<2x8x32xf32> to vector<16x32xf32>
    %c1_78 = arith.constant 1 : index
    %c0_79 = arith.constant 0 : index
    %c0_80 = arith.constant 0 : index
    %215 = vector.load %arg9[%c1_78, %c0_79, %c0_80] : memref<2x32x64xf32, #tpu.memory_space<vmem>>, vector<1x32x64xf32>
    %216 = vector.shape_cast %215 : vector<1x32x64xf32> to vector<32x64xf32>
    %cst_81 = arith.constant dense<0.000000e+00> : vector<16x64xf32>
    %217 = tpu.matmul %214, %216, %cst_81 {dimension_numbers = #tpu.dot_dimension_numbers<[1], [0], [0], [1], [0, 0, 1, 1], [], []>} : vector<16x32xf32>, vector<32x64xf32>, vector<16x64xf32> -> vector<16x64xf32>
    %cst_82 = arith.constant 0.000000e+00 : f32
    %218 = vector.broadcast %cst_82 : f32 to vector<16x64xf32>
    %219 = arith.maximumf %217, %218 : vector<16x64xf32>
    %c1_83 = arith.constant 1 : index
    %c0_84 = arith.constant 0 : index
    %c0_85 = arith.constant 0 : index
    %220 = vector.load %arg10[%c1_83, %c0_84, %c0_85] : memref<2x64x32xf32, #tpu.memory_space<vmem>>, vector<1x64x32xf32>
    %221 = vector.shape_cast %220 : vector<1x64x32xf32> to vector<64x32xf32>
    %cst_86 = arith.constant dense<0.000000e+00> : vector<16x32xf32>
    %222 = tpu.matmul %219, %221, %cst_86 {dimension_numbers = #tpu.dot_dimension_numbers<[1], [0], [0], [1], [0, 0, 1, 1], [], []>} : vector<16x64xf32>, vector<64x32xf32>, vector<16x32xf32> -> vector<16x32xf32>
    %223 = vector.shape_cast %222 : vector<16x32xf32> to vector<2x8x32xf32>
    %224 = arith.addf %198, %223 : vector<2x8x32xf32>
    %c0_87 = arith.constant 0 : index
    %c0_88 = arith.constant 0 : index
    %225 = vector.load %arg11[%c0_87, %c0_88] : memref<1x32xf32, #tpu.memory_space<vmem>>, vector<1x32xf32>
    %226 = arith.mulf %224, %224 : vector<2x8x32xf32>
    %cst_89 = arith.constant dense<0.000000e+00> : vector<2x8xf32>
    %227 = vector.multi_reduction <add>, %226, %cst_89 [2] : vector<2x8x32xf32> to vector<2x8xf32>
    %228 = vector.shape_cast %227 : vector<2x8xf32> to vector<2x8x1xf32>
    %cst_90 = arith.constant 3.200000e+01 : f32
    %229 = vector.broadcast %cst_90 : f32 to vector<2x8x1xf32>
    %230 = arith.divf %228, %229 : vector<2x8x1xf32>
    %cst_91 = arith.constant 9.99999997E-7 : f32
    %231 = vector.broadcast %cst_91 : f32 to vector<2x8x1xf32>
    %232 = arith.addf %230, %231 : vector<2x8x1xf32>
    %233 = math.rsqrt %232 : vector<2x8x1xf32>
    %234 = vector.broadcast %233 : vector<2x8x1xf32> to vector<2x8x32xf32>
    %235 = arith.mulf %224, %234 : vector<2x8x32xf32>
    %236 = vector.shape_cast %225 : vector<1x32xf32> to vector<1x1x32xf32>
    %237 = vector.broadcast %236 : vector<1x1x32xf32> to vector<2x8x32xf32>
    %238 = arith.mulf %235, %237 : vector<2x8x32xf32>
    %cst_92 = arith.constant dense<0.000000e+00> : vector<2x32xf32>
    %239 = vector.multi_reduction <add>, %238, %cst_92 [1] : vector<2x8x32xf32> to vector<2x32xf32>
    %cst_93 = arith.constant 8.000000e+00 : f32
    %240 = vector.broadcast %cst_93 : f32 to vector<2x32xf32>
    %241 = arith.divf %239, %240 : vector<2x32xf32>
    %c0_94 = arith.constant 0 : index
    %c0_95 = arith.constant 0 : index
    %242 = vector.load %arg12[%c0_94, %c0_95] : memref<32x128xf32, #tpu.memory_space<vmem>>, vector<32x128xf32>
    %cst_96 = arith.constant dense<0.000000e+00> : vector<2x128xf32>
    %243 = tpu.matmul %241, %242, %cst_96 {dimension_numbers = #tpu.dot_dimension_numbers<[1], [0], [0], [1], [0, 0, 1, 1], [], []>} : vector<2x32xf32>, vector<32x128xf32>, vector<2x128xf32> -> vector<2x128xf32>
    %c0_97 = arith.constant 0 : index
    %c0_98 = arith.constant 0 : index
    %244 = vector.load %arg13[%c0_97, %c0_98] : memref<1x128xf32, #tpu.memory_space<vmem>>, vector<1x128xf32>
    %245 = vector.broadcast %244 : vector<1x128xf32> to vector<2x128xf32>
    %246 = arith.addf %243, %245 : vector<2x128xf32>
    %247 = math.tanh %246 : vector<2x128xf32>
    %c0_99 = arith.constant 0 : index
    %c0_100 = arith.constant 0 : index
    %248 = vector.load %arg14[%c0_99, %c0_100] : memref<128x1xf32, #tpu.memory_space<vmem>>, vector<128x1xf32>
    %cst_101 = arith.constant dense<0.000000e+00> : vector<2x1xf32>
    %249 = tpu.matmul %247, %248, %cst_101 {dimension_numbers = #tpu.dot_dimension_numbers<[1], [0], [0], [1], [0, 0, 1, 1], [], []>} : vector<2x128xf32>, vector<128x1xf32>, vector<2x1xf32> -> vector<2x1xf32>
    %c0_102 = arith.constant 0 : index
    %c0_103 = arith.constant 0 : index
    %250 = vector.load %arg15[%c0_102, %c0_103] : memref<1x1xf32, #tpu.memory_space<vmem>>, vector<1x1xf32>
    %251 = vector.broadcast %250 : vector<1x1xf32> to vector<2x1xf32>
    %252 = arith.addf %249, %251 : vector<2x1xf32>
    %253 = arith.negf %252 : vector<2x1xf32>
    %254 = math.exp %253 : vector<2x1xf32>
    %cst_104 = arith.constant 1.000000e+00 : f32
    %255 = vector.broadcast %cst_104 : f32 to vector<2x1xf32>
    %256 = arith.addf %255, %254 : vector<2x1xf32>
    %257 = arith.divf %255, %256 : vector<2x1xf32>
    %c0_105 = arith.constant 0 : index
    %c0_106 = arith.constant 0 : index
    %258 = vector.load %arg16[%c0_105, %c0_106] : memref<2x1xf32, #tpu.memory_space<vmem>>, vector<2x1xf32>
    tpu.vector_store %arg16[%c0_105, %c0_106], %257 {strides = array<i32>} : memref<2x1xf32, #tpu.memory_space<vmem>>, vector<2x1xf32>,
    return
  }
}

</mosaic_0001>

<bundles_post_ra>
// kernel: tpu_custom_call.1
= control target key start
LH: loop header
LB: loop body
LE: loop exit
PB: predicated region body
PF: predicated region fallthrough
CT: control target
= control target key end

     0   :  { %s5878_s0 = inlined_call_operand.hbm [shape: f32[2,8,32], index: 0, kind: input, shape index: {}]   ;;  %s5879_s1 = inlined_call_operand.vmem [shape: f32[8,8,8], index: 1, kind: input, shape index: {}]   ;;  %s5880_s2 = inlined_call_operand.hbm [shape: f32[4,32], index: 2, kind: input, shape index: {}]   ;;  %s5881_s3 = inlined_call_operand.vmem [shape: f32[2,1,32], index: 3, kind: input, shape index: {}]   ;;  %s5882_s4 = inlined_call_operand.vmem [shape: f32[2,32,32], index: 4, kind: input, shape index: {}]   ;;  %s5883_s5 = inlined_call_operand.vmem [shape: f32[2,32,32], index: 5, kind: input, shape index: {}]   ;;  %s5884_s6 = inlined_call_operand.vmem [shape: f32[2,32,32], index: 6, kind: input, shape index: {}]   ;;  %s5885_s7 = inlined_call_operand.vmem [shape: f32[2,32,32], index: 7, kind: input, shape index: {}]   ;;  %s5886_s8 = inlined_call_operand.hbm [shape: f32[2,1,32], index: 8, kind: input, shape index: {}]   ;;  %s5887_s9 = inlined_call_operand.hbm [shape: f32[2,32,64], index: 9, kind: input, shape index: {}]   ;;  %s5888_s10 = inlined_call_operand.vmem [shape: f32[2,64,32], index: 10, kind: input, shape index: {}]   ;;  %s5889_s11 = inlined_call_operand.vmem [shape: f32[1,32], index: 11, kind: input, shape index: {}]   ;;  %s5890_s12 = inlined_call_operand.vmem [shape: f32[32,128], index: 12, kind: input, shape index: {}]   ;;  %s5891_s13 = inlined_call_operand.vmem [shape: f32[1,128], index: 13, kind: input, shape index: {}]   ;;  %s5892_s14 = inlined_call_operand.vmem [shape: f32[128,1], index: 14, kind: input, shape index: {}]   ;;  %s5893_s15 = inlined_call_operand.<no memory space> [shape: f32[1,1], index: 15, kind: input, shape index: {}]   ;;  %s5894_s16 = inlined_call_operand.vmem [shape: f32[2,1], index: 16, kind: output, shape index: {}]  }
   0x1   :  { %5896 = sst [smem:[#allocation13_spill]] %s5878_s0  ;;  %v21_v0 = vstv %s5893_s15 }
   0x2   :  { %22 = vst [vmem:[#allocation2] sm:$0x1] %v21_v0 }
   0x3   :  { %23 = vsyncpa [#allocation4], 0 }
   0x4   :  { %24 = vsyncpa [#allocation6], 0 }
   0x5   :  { %25 = vsyncpa [#allocation9], 0  ;;  %s5087_s23 = smov [#allocation5]   ;;  %s5088_s25 = smov [#allocation3]  }
   0x6   :  { %s46_s24 = sshll.u32 %s5087_s23, 4  ;;  %s31_s26 = sshll.u32 %s5088_s25, 4  ;;  %s47_s24 = int_to_ptr.vmem [resolvable:$true] %s46_s24  ;;  %s5187_s26 = int_to_ptr.vmem [resolvable:$true] %s31_s26 }
   0x7   :  { %s4993_s29 = scalar_lea.hbm %s5880_s2, 64 }
   0x8   :  { %p4994_p0 = scmp.ne.s32.totalorder %s5880_s2, %s4993_s29  ;;  %p4997_p1 = scmp.lt.u32.totalorder %s4993_s29, %s5880_s2 }
   0xa   :  { %p4999_p2 = pnand %p4997_p1, %p4994_p0 }
   0xc   :  { %5002 = shalt.err (!%p4999_p2)
}
   0xd   :  { %s5003_s18 = scalar_lea.vmem %s47_s24, 64  ;;  %p5008_p4 = scmp.lt.s32.totalorder %s47_s24, %s47_s24 }
   0xe   :  { %p5004_p3 = scmp.ne.s32.totalorder %s47_s24, %s5003_s18  ;;  %p5009_p5 = scmp.lt.s32.totalorder %s5003_s18, %s5003_s18 }
  0x10   :  { %p5010_p6 = por %p5009_p5, %p5008_p4 }
  0x12   :  { %p5011_p7 = pnand %p5010_p6, %p5004_p3 }
  0x14   :  { %5014 = shalt.err (!%p5011_p7)
}
  0x15   :  { %49 = dma.hbm_to_vmem [thread:$0]  %s5880_s2, 64, %s47_s24, [#allocation6]  }
  0x16   :  { %s5897_s23 = sld [smem:[#allocation13_spill]] }
  0x1c   :  { %s5015_s25 = scalar_lea.hbm %s5897_s23, 256 }
  0x1d   :  { %p5016_p8 = scmp.ne.s32.totalorder %s5897_s23, %s5015_s25  ;;  %p5019_p9 = scmp.lt.u32.totalorder %s5015_s25, %s5897_s23 }
  0x1f   :  { %p5021_p10 = pnand %p5019_p9, %p5016_p8 }
  0x21   :  { %5024 = shalt.err (!%p5021_p10)
}
  0x22   :  { %s5025_s0 = scalar_lea.vmem %s5187_s26, 256  ;;  %p5030_p12 = scmp.lt.s32.totalorder %s5187_s26, %s5187_s26 }
  0x23   :  { %p5026_p11 = scmp.ne.s32.totalorder %s5187_s26, %s5025_s0  ;;  %p5031_p13 = scmp.lt.s32.totalorder %s5025_s0, %s5025_s0 }
  0x25   :  { %p5032_p0 = por %p5031_p13, %p5030_p12 }
  0x27   :  { %p5033_p1 = pnand %p5032_p0, %p5026_p11 }
  0x29   :  { %5036 = shalt.err (!%p5033_p1)
}
  0x2a   :  { %s5089_s2 = smov 128   ;;  %s5090_s24 = smov 8  }
  0x2b   :  { %37 = dma.hbm_to_vmem [thread:$0]  %s5897_s23, 256, %s5187_s26, [#allocation4], %s5089_s2, %s5089_s2, %s5090_s24  }
  0x2c   :  { %s5091_s18 = smov [#allocation7]   ;;  %s5037_s22 = scalar_lea.hbm %s5886_s8, 32 }
  0x2d   :  { %s65_s19 = sshll.u32 %s5091_s18, 4  ;;  %p5038_p2 = scmp.ne.s32.totalorder %s5886_s8, %s5037_s22  ;;  %s66_s19 = int_to_ptr.vmem [resolvable:$true] %s65_s19 }
  0x2e   :  { %p5041_p3 = scmp.lt.u32.totalorder %s5037_s22, %s5886_s8 }
  0x30   :  { %p5043_p4 = pnand %p5041_p3, %p5038_p2 }
  0x32   :  { %5046 = shalt.err (!%p5043_p4)
}
  0x33   :  { %s5047_s30 = scalar_lea.vmem %s66_s19, 32  ;;  %p5052_p6 = scmp.lt.s32.totalorder %s66_s19, %s66_s19 }
  0x34   :  { %p5048_p5 = scmp.ne.s32.totalorder %s66_s19, %s5047_s30  ;;  %p5053_p7 = scmp.lt.s32.totalorder %s5047_s30, %s5047_s30 }
  0x36   :  { %p5054_p8 = por %p5053_p7, %p5052_p6 }
  0x38   :  { %p5055_p9 = pnand %p5054_p8, %p5048_p5 }
  0x3a   :  { %5058 = shalt.err (!%p5055_p9)
}
  0x3b   :  { %s5092_s26 = smov 16   ;;  %s5093_s23 = smov 1  }
  0x3c   :  { %71 = dma.hbm_to_vmem [thread:$0]  %s5886_s8, 32, %s66_s19, [#allocation6], %s5092_s26, %s5092_s26, %s5093_s23  }
  0x3d   :  { %s5094_s17 = smov [#allocation8]   ;;  %s5059_s22 = scalar_lea.hbm %s5887_s9, 1024 }
  0x3e   :  { %s77_s18 = sshll.u32 %s5094_s17, 4  ;;  %p5060_p10 = scmp.ne.s32.totalorder %s5887_s9, %s5059_s22  ;;  %s78_s18 = int_to_ptr.vmem [resolvable:$true] %s77_s18 }
  0x3f   :  { %p5063_p11 = scmp.lt.u32.totalorder %s5059_s22, %s5887_s9 }
  0x41   :  { %p5065_p12 = pnand %p5063_p11, %p5060_p10 }
  0x43   :  { %5068 = shalt.err (!%p5065_p12)
}
  0x44   :  { %s5069_s30 = scalar_lea.vmem %s78_s18, 1024  ;;  %p5074_p0 = scmp.lt.s32.totalorder %s78_s18, %s78_s18 }
  0x45   :  { %p5070_p13 = scmp.ne.s32.totalorder %s78_s18, %s5069_s30  ;;  %p5075_p1 = scmp.lt.s32.totalorder %s5069_s30, %s5069_s30 }
  0x47   :  { %p5076_p2 = por %p5075_p1, %p5074_p0 }
  0x49   :  { %p5077_p3 = pnand %p5076_p2, %p5070_p13 }
  0x4b   :  { %5080 = shalt.err (!%p5077_p3)
}
  0x4c   :  { %83 = dma.hbm_to_vmem [thread:$0]  %s5887_s9, 1024, %s78_s18, [#allocation9], %s5089_s2, %s5089_s2, %s5090_s24  }
  0x4d   :  { %5081 = dma.done.wait [#allocation4], 256  }
  0x4e   :  { %5082 = vsyncadd [#allocation4], 4294967040 }
  0x4f   :  { %5083 = dma.done.wait [#allocation6], 96  }
  0x50   :  { %5084 = vsyncadd [#allocation6], 4294967200 }
  0x51   :  { %5085 = dma.done.wait [#allocation9], 1024  }
  0x52   :  { %5086 = vsyncadd [#allocation9], 4294966272  ;;  %v5248_v1 = vld [vmem:[#allocation3] sm:$0xff]  ;;  %vm122_vm0 = vcmask 261120   ;;  %v5250_v2 = vld [vmem:[#allocation3 + $0x8] sm:$0xff]  ;;  %v5095_v38 = vmov 0.0   ;;  %v401_v41 = vlaneseq }
  0x53   :  { %v120_v3 = vmul.f32 %v5248_v1, %v5248_v1  ;;  %v121_v4 = vmul.f32 %v5250_v2, %v5250_v2  ;;  %v146_v7 = vld [vmem:[%s5882_s4] sm:$0xff]  ;;  %v147_v8 = vld [vmem:[%s5882_s4 + $0x8] sm:$0xff]  ;;  %v148_v9 = vld [vmem:[%s5882_s4 + $0x10] sm:$0xff]  ;;  %4409 = vmatprep.subr.mxu1 %v5095_v38  ;;  %vm5096_vm1 = vmmov 0   ;;  %v5097_v39 = vmov 1966171168  }
  0x54   :  { %v4725_v10 = vpack.c.bf16 %v147_v8, %v146_v7  ;;  %v149_v11 = vld [vmem:[%s5882_s4 + $0x18] sm:$0xff]  ;;  %v231_v13 = vld [vmem:[%s5883_s5] sm:$0xff]  ;;  %v232_v14 = vld [vmem:[%s5883_s5 + $0x8] sm:$0xff]  ;;  %4411 = vmatprep.mubr.msk.f32.mxu1 %vm5096_vm1, %v5095_v38  ;;  %v399_v40 = vunpack.c.l.s4 %v5097_v39  ;;  %v402_v43 = vshrl.u32 %v401_v41, 7  ;;  %vm1040_vm2 = vcmask 64512  }
  0x55   :  { %v123_v5 = vsel %vm122_vm0, %v120_v3, 0.0  ;;  %v126_v6 = vsel %vm122_vm0, %v121_v4, 0.0  ;;  %v4729_v12 = vpack.c.bf16 %v149_v11, %v148_v9  ;;  %v4733_v15 = vpack.c.bf16 %v232_v14, %v231_v13  ;;  %v4098_v23 = vld [vmem:[%s5881_s3] ss:$0 sm:$0xff]  ;;  %v233_v27 = vld [vmem:[%s5883_s5 + $0x10] sm:$0xff]  ;;  %v234_v28 = vld [vmem:[%s5883_s5 + $0x18] sm:$0xff] }
  0x56   :  { %124 = vadd.xlane.f32.xlu0 %v123_v5  ;;  %4726 = vmatprep.subr.bf16.mxu0 %v4725_v10  ;;  %v4737_v31 = vpack.c.bf16 %v234_v28, %v233_v27  ;;  %v310_v32 = vld [vmem:[%s5884_s6] sm:$0xff]  ;;  %v311_v33 = vld [vmem:[%s5884_s6 + $0x8] sm:$0xff]  ;;  %v312_v35 = vld [vmem:[%s5884_s6 + $0x10] sm:$0xff]  ;;  %v400_v42 = vunpack.c.0.s8 %v399_v40  ;;  %v416_v50 = vsub.s32 0, %v402_v43  ;;  %vm1926_vm3 = vcmask 523264  }
  0x57   :  { %4728 = vmatpush3.bf16.msra.mxu0 %v4725_v10  ;;  %v4741_v34 = vpack.c.bf16 %v311_v33, %v310_v32  ;;  %v313_v36 = vld [vmem:[%s5884_s6 + $0x18] sm:$0xff]  ;;  %v4105_v44 = vld.sshfl [vmem:[#allocation5] sm:$0x33 pattern:$0x75316420]  ;;  %v5380_v10 = vld [vmem:[%s5879_s1] sm:$0xff] }
  0x58   :  { %4730 = vmatprep.subr.bf16.mxu0 %v4729_v12  ;;  %v4745_v37 = vpack.c.bf16 %v313_v36, %v312_v35  ;;  %v403_v45 = vsub.s32 %v400_v42, %v402_v43  ;;  %v397_v47 = vcombine.high %v4105_v44, %v4105_v44  ;;  %v5385_v11 = vld [vmem:[%s5879_s1 + $0x8] sm:$0xff]  ;;  %v5421_v41 = vld [vmem:[%s5879_s1 + $0x30] sm:$0xff]  ;;  %vm3915_vm4 = vcmask 1041409  }
  0x59   :  { %vm4089_vm5 = vcmask 1024  }
  0x5a   :  { %127 = vadd.xlane.f32.xlu0 %v126_v6  ;;  %v404_v49 = vrot.slane %v4105_v44, %v403_v45  ;;  %v411_v51 = vrot.slane %v397_v47, %v403_v45  ;;  %v5428_v47 = vld [vmem:[%s5879_s1 + $0x38] sm:$0xff] }
  0x5b   :  { %4732 = vmatpush3.bf16.msra.mxu0 %v4729_v12 }
  0x5c   :  { %4734 = vmatprep.subr.bf16.mxu0 %v4733_v15  ;;  %v412_v52 = vcombine.high %v404_v49, %v404_v49  ;;  %v5311_v53 = vrot.slane %v404_v49, %v416_v50  ;;  %v5313_v54 = vrot.slane %v411_v51, %v416_v50  ;;  %v413_v55 = vcombine.high %v411_v51, %v411_v51 }
  0x5e   :  { %v5317_v58 = vrot.slane %v412_v52, %v416_v50  ;;  %v5323_v61 = vrot.slane %v413_v55, %v416_v50 }
  0xe3   :  { %v125_v16 = vpop.xlane.xlu0 %124 }
  0xe4   :  { %v130_v17 = vmul.f32 0.03125, %v125_v16 }
  0xe6   :  { %v132_v18 = vadd.f32 1e-06, %v130_v17 }
  0xe7   :  { %v128_v19 = vpop.xlane.xlu0 %127 }
  0xe8   :  { %4903 = vrsqrt.f32 %v132_v18  ;;  %v131_v20 = vmul.f32 0.03125, %v128_v19  ;;  %v5392_v18 = vld [vmem:[%s5879_s1 + $0x10] sm:$0xff] }
  0xea   :  { %v133_v21 = vadd.f32 1e-06, %v131_v20 }
  0xec   :  { %4905 = vrsqrt.f32 %v133_v21  ;;  %v5399_v21 = vld [vmem:[%s5879_s1 + $0x18] sm:$0xff] }
  0xf2   :  { %v4904_v22 = vpop.eup %4903 }
  0xf3   :  { %v136_v24 = vmul.f32 %v4904_v22, %v5248_v1 }
  0xf5   :  { %v144_v25 = vmul.f32 %v4098_v23, %v136_v24 }
  0xf6   :  { %v4906_v26 = vpop.eup %4905 }
  0xf7   :  { %v137_v29 = vmul.f32 %v4906_v26, %v5250_v2  ;;  %4379 = vmatprep.mubr.msk.f32.mxu0 %vm122_vm0, %v144_v25 }
  0xf9   :  { %v145_v30 = vmul.f32 %v4098_v23, %v137_v29  ;;  %v5407_v29 = vld [vmem:[%s5879_s1 + $0x20] sm:$0xff] }
  0xfb   :  { %4380 = vmatmul.mubr.msk.f32.vlgmr.msra.gmra.mrb[0].mxu0 %vm122_vm0, %v145_v30 }
  0xfc   :  { %4736 = vmatpush3.bf16.msra.mxu0 %v4733_v15  ;;  %4390 = vmatprep.mubr.msk.f32.mxu0 %vm122_vm0, %v144_v25 }
  0xfd   :  { %4738 = vmatprep.subr.bf16.mxu0 %v4737_v31 }
 0x100   :  { %4740 = vmatpush3.bf16.msra.mxu0 %v4737_v31 }
 0x101   :  { %4742 = vmatprep.subr.bf16.mxu0 %v4741_v34 }
 0x103   :  { %4391 = vmatmul.mubr.msk.f32.vlgmr.msra.gmra.mrb[2].mxu0 %vm122_vm0, %v145_v30 }
 0x104   :  { %4744 = vmatpush3.bf16.msra.mxu0 %v4741_v34  ;;  %4401 = vmatprep.mubr.msk.f32.mxu0 %vm122_vm0, %v144_v25 }
 0x105   :  { %4746 = vmatprep.subr.bf16.mxu0 %v4745_v37 }
 0x108   :  { %4748 = vmatpush3.bf16.msra.mxu0 %v4745_v37 }
 0x109   :  { %4404 = vmatprep.subr.mxu0 %v5095_v38 }
 0x10b   :  { %4402 = vmatmul.mubr.msk.f32.vlgmr.msra.gmra.mrb[4].mxu0 %vm122_vm0, %v145_v30  ;;  %v5412_v30 = vld [vmem:[%s5879_s1 + $0x28] sm:$0xff] }
 0x10c   :  { %4406 = vmatprep.mubr.msk.f32.mxu0 %vm5096_vm1, %v5095_v38 }
 0x1ce   :  { %v4381_v46 = vpop.f32.mrb[0].mxu0 }
 0x1cf   :  { %v222_v48 = vpop.f32.mrb[1].mxu0  ;;  %v438_v4 = vmul.f32 %v4381_v46, %v5311_v53  ;;  %v439_v5 = vmul.f32 %v4381_v46, %v5313_v54  ;;  %v440_v6 = vmul.f32 %v4381_v46, %v5317_v58  ;;  %v441_v7 = vmul.f32 %v4381_v46, %v5323_v61 }
 0x1d0   :  { %v434_v59 = vmul.f32 %v5311_v53, %v222_v48  ;;  %v435_v60 = vmul.f32 %v5313_v54, %v222_v48  ;;  %v436_v62 = vmul.f32 %v5317_v58, %v222_v48  ;;  %v437_v63 = vmul.f32 %v5323_v61, %v222_v48 }
 0x1d6   :  { %v4392_v56 = vpop.f32.mrb[2].mxu0 }
 0x1d7   :  { %v301_v57 = vpop.f32.mrb[3].mxu0 }
 0x1d8   :  { %4405 = vmatpush3.xpose.msk.msra.mxu0 %vm122_vm0, %v301_v57  ;;  %4410 = vmatpush3.xpose.msk.msra.mxu1 %vm122_vm0, %v301_v57 }
 0x1d9   :  { %4414 = vmatprep.subr.mxu0 %v5095_v38  ;;  %4419 = vmatprep.subr.mxu1 %v5095_v38 }
 0x1db   :  { %4407 = vmatmul.mubr.msk.f32.vlgmr.msra.gmra.mrb[6].mxu0 %vm122_vm0, %v434_v59  ;;  %4412 = vmatmul.mubr.msk.f32.vlgmr.msra.gmra.mrb[0].mxu1 %vm122_vm0, %v435_v60 }
 0x1dc   :  { %4415 = vmatpush3.xpose.msk.msra.mxu0 %vm122_vm0, %v301_v57  ;;  %4420 = vmatpush3.xpose.msk.msra.mxu1 %vm122_vm0, %v301_v57 }
 0x1dd   :  { %4416 = vmatprep.mubr.msk.f32.mxu0 %vm5096_vm1, %v5095_v38  ;;  %4421 = vmatprep.mubr.msk.f32.mxu1 %vm5096_vm1, %v5095_v38 }
 0x1de   :  { %v5335_v0 = vpop.f32.mrb[4].mxu0  ;;  %4424 = vmatprep.subr.mxu0 %v5095_v38  ;;  %4429 = vmatprep.subr.mxu1 %v5095_v38 }
 0x1df   :  { %v5339_v3 = vpop.f32.mrb[5].mxu0  ;;  %4417 = vmatmul.mubr.msk.f32.vlgmr.msra.gmra.mrb[8].mxu0 %vm122_vm0, %v436_v62  ;;  %4422 = vmatmul.mubr.msk.f32.vlgmr.msra.gmra.mrb[2].mxu1 %vm122_vm0, %v437_v63  ;;  %v446_v8 = vmul.f32 %v5335_v0, %v5311_v53 }
 0x1e0   :  { %4425 = vmatpush3.xpose.msk.msra.mxu0 %vm122_vm0, %v4392_v56  ;;  %4430 = vmatpush3.xpose.msk.msra.mxu1 %vm122_vm0, %v4392_v56  ;;  %v442_v9 = vmul.f32 %v5311_v53, %v5339_v3 }
 0x1e1   :  { %4426 = vmatprep.mubr.msk.f32.mxu0 %vm5096_vm1, %v5095_v38  ;;  %4431 = vmatprep.mubr.msk.f32.mxu1 %vm5096_vm1, %v5095_v38 }
 0x1e2   :  { %4434 = vmatprep.subr.mxu0 %v5095_v38  ;;  %4439 = vmatprep.subr.mxu1 %v5095_v38 }
 0x1e3   :  { %4427 = vmatmul.mubr.msk.f32.vlgmr.msra.gmra.mrb[10].mxu0 %vm122_vm0, %v438_v4  ;;  %4432 = vmatmul.mubr.msk.f32.vlgmr.msra.gmra.mrb[4].mxu1 %vm122_vm0, %v439_v5 }
 0x1e4   :  { %4435 = vmatpush3.xpose.msk.msra.mxu0 %vm122_vm0, %v4392_v56  ;;  %4440 = vmatpush3.xpose.msk.msra.mxu1 %vm122_vm0, %v4392_v56 }
 0x1e5   :  { %4436 = vmatprep.mubr.msk.f32.mxu0 %vm5096_vm1, %v5095_v38  ;;  %4441 = vmatprep.mubr.msk.f32.mxu1 %vm5096_vm1, %v5095_v38 }
 0x1e6   :  { %4444 = vmatprep.subr.mxu0 %v5095_v38  ;;  %4464 = vmatprep.subr.mxu1 %v5095_v38 }
 0x1e7   :  { %4437 = vmatmul.mubr.msk.f32.vlgmr.msra.gmra.mrb[12].mxu0 %vm122_vm0, %v440_v6  ;;  %4442 = vmatmul.mubr.msk.f32.vlgmr.msra.gmra.mrb[6].mxu1 %vm122_vm0, %v441_v7 }
 0x1e8   :  { %4445 = vmatpush3.msra.mxu0 %v442_v9  ;;  %4465 = vmatpush3.msra.mxu1 %v446_v8 }
 0x1e9   :  { %4446 = vmatprep.mubr.msk.f32.mxu0 %vm5096_vm1, %v5095_v38  ;;  %4449 = vmatprep.subr.mxu0 %v5095_v38 }
 0x1ea   :  { %4466 = vmatprep.mubr.msk.f32.mxu1 %vm5096_vm1, %v5095_v38  ;;  %4469 = vmatprep.subr.mxu1 %v5095_v38 }
 0x2ae   :  { %v522_v12 = vpop.f32.mrb[6].mxu0  ;;  %v595_v13 = vpop.f32.mrb[0].mxu1 }
 0x2af   :  { %v523_v14 = vadd.f32 %v522_v12, %v5380_v10  ;;  %v596_v15 = vadd.f32 %v595_v13, %v5385_v11  ;;  %v4408_v16 = vpop.f32.mrb[7].mxu0  ;;  %v4413_v17 = vpop.f32.mrb[1].mxu1 }
 0x2b1   :  { %v1044_v19 = vsel %vm1040_vm2, %v596_v15, -inf  ;;  %v1041_v20 = vsel %vm1040_vm2, %v523_v14, -inf }
 0x2b2   :  { %1045 = vmax.xlane.f32.xlu0 %v1044_v19  ;;  %1042 = vmax.xlane.f32.xlu1 %v1041_v20  ;;  %v668_v22 = vpop.f32.mrb[8].mxu0  ;;  %v741_v23 = vpop.f32.mrb[2].mxu1 }
 0x2b3   :  { %v669_v24 = vadd.f32 %v668_v22, %v5392_v18  ;;  %v4418_v25 = vpop.f32.mrb[9].mxu0  ;;  %v4423_v26 = vpop.f32.mrb[3].mxu1  ;;  %v742_v27 = vadd.f32 %v741_v23, %v5399_v21 }
 0x2b5   :  { %v1047_v28 = vsel %vm1040_vm2, %v669_v24, -inf  ;;  %v1050_v36 = vsel %vm1040_vm2, %v742_v27, -inf }
 0x2b6   :  { %1048 = vmax.xlane.f32.xlu0 %v1047_v28  ;;  %v890_v31 = vpop.f32.mrb[4].mxu1  ;;  %v817_v32 = vpop.f32.mrb[10].mxu0 }
 0x2b7   :  { %v818_v33 = vadd.f32 %v817_v32, %v5407_v29  ;;  %v4428_v34 = vpop.f32.mrb[11].mxu0  ;;  %v4433_v35 = vpop.f32.mrb[5].mxu1  ;;  %v891_v37 = vadd.f32 %v890_v31, %v5412_v30 }
 0x2b9   :  { %v1053_v39 = vsel %vm1040_vm2, %v818_v33, -inf  ;;  %v1056_v46 = vsel %vm1040_vm2, %v891_v37, -inf }
 0x2ba   :  { %1051 = vmax.xlane.f32.xlu0 %v1050_v36  ;;  %v1036_v40 = vpop.f32.mrb[6].mxu1  ;;  %1054 = vmax.xlane.f32.xlu1 %v1053_v39  ;;  %v963_v42 = vpop.f32.mrb[12].mxu0 }
 0x2bb   :  { %v4438_v43 = vpop.f32.mrb[13].mxu0  ;;  %v4443_v44 = vpop.f32.mrb[7].mxu1  ;;  %v964_v45 = vadd.f32 %v963_v42, %v5421_v41  ;;  %v1037_v48 = vadd.f32 %v1036_v40, %v5428_v47 }
 0x2bd   :  { %v1059_v49 = vsel %vm1040_vm2, %v964_v45, -inf  ;;  %v1062_v50 = vsel %vm1040_vm2, %v1037_v48, -inf }
 0x2be   :  { %1057 = vmax.xlane.f32.xlu1 %v1056_v46 }
 0x2c2   :  { %1060 = vmax.xlane.f32.xlu1 %v1059_v49 }
 0x2c6   :  { %1063 = vmax.xlane.f32.xlu1 %v1062_v50  ;;  %v443_v50 = vmul.f32 %v5313_v54, %v5339_v3 }
 0x33f   :  { %v1046_v51 = vpop.xlane.xlu0 %1045  ;;  %v1043_v52 = vpop.xlane.xlu1 %1042 }
 0x340   :  { %v1066_v55 = vsub.f32 %v596_v15, %v1046_v51  ;;  %v1065_v56 = vsub.f32 %v523_v14, %v1043_v52 }
 0x342   :  { %v1073_v57 = vmul.f32 1.442695, %v1065_v56  ;;  %v1075_v59 = vmul.f32 1.442695, %v1066_v55 }
 0x343   :  { %v1049_v60 = vpop.xlane.xlu0 %1048 }
 0x344   :  { %v1067_v62 = vsub.f32 %v669_v24, %v1049_v60  ;;  %4907 = vpow2.f32 %v1073_v57 }
 0x345   :  { %4909 = vpow2.f32 %v1075_v59  ;;  %v444_v59 = vmul.f32 %v5317_v58, %v5339_v3 }
 0x346   :  { %v1077_v63 = vmul.f32 1.442695, %v1067_v62 }
 0x347   :  { %v1052_v4 = vpop.xlane.xlu0 %1051  ;;  %v1055_v6 = vpop.xlane.xlu1 %1054 }
 0x348   :  { %v1068_v5 = vsub.f32 %v742_v27, %v1052_v4  ;;  %v1069_v7 = vsub.f32 %v818_v33, %v1055_v6  ;;  %4911 = vpow2.f32 %v1077_v63  ;;  %v447_v63 = vmul.f32 %v5335_v0, %v5313_v54 }
 0x34a   :  { %v1079_v8 = vmul.f32 1.442695, %v1068_v5  ;;  %v1081_v9 = vmul.f32 1.442695, %v1069_v7  ;;  %v445_v7 = vmul.f32 %v5323_v61, %v5339_v3 }
 0x34b   :  { %v1058_v12 = vpop.xlane.xlu1 %1057 }
 0x34c   :  { %4913 = vpow2.f32 %v1081_v9  ;;  %v1070_v13 = vsub.f32 %v891_v37, %v1058_v12  ;;  %v448_v12 = vmul.f32 %v5335_v0, %v5317_v58 }
 0x34d   :  { %4915 = vpow2.f32 %v1079_v8 }
 0x34e   :  { %v4908_v16 = vpop.eup %4907  ;;  %v1083_v14 = vmul.f32 1.442695, %v1070_v13 }
 0x34f   :  { %v1061_v15 = vpop.xlane.xlu1 %1060  ;;  %v1089_v17 = vsel %vm1040_vm2, %v4908_v16, 0.0  ;;  %v4910_v19 = vpop.eup %4909 }
 0x350   :  { %4917 = vpow2.f32 %v1083_v14  ;;  %v1071_v20 = vsub.f32 %v964_v45, %v1061_v15  ;;  %1090 = vadd.xlane.f32.xlu0 %v1089_v17  ;;  %v1092_v24 = vsel %vm1040_vm2, %v4910_v19, 0.0  ;;  %v449_v15 = vmul.f32 %v5335_v0, %v5323_v61  ;;  %v1720_v0 = vld [vmem:[%s5885_s7 + $0x8] sm:$0xff] }
 0x352   :  { %v1085_v22 = vmul.f32 1.442695, %v1071_v20  ;;  %v4912_v25 = vpop.eup %4911  ;;  %v1719_v20 = vld [vmem:[%s5885_s7] sm:$0xff] }
 0x353   :  { %v1064_v23 = vpop.xlane.xlu1 %1063  ;;  %v1095_v31 = vsel %vm1040_vm2, %v4912_v25, 0.0 }
 0x354   :  { %4919 = vpow2.f32 %v1085_v22  ;;  %v1072_v26 = vsub.f32 %v1037_v48, %v1064_v23  ;;  %1093 = vadd.xlane.f32.xlu0 %v1092_v24  ;;  %v4749_v22 = vpack.c.bf16 %v1720_v0, %v1719_v20  ;;  %v1721_v23 = vld [vmem:[%s5885_s7 + $0x10] sm:$0xff]  ;;  %v1722_v24 = vld [vmem:[%s5885_s7 + $0x18] sm:$0xff] }
 0x356   :  { %v4914_v27 = vpop.eup %4913  ;;  %v1087_v28 = vmul.f32 1.442695, %v1072_v26 }
 0x357   :  { %v1101_v32 = vsel %vm1040_vm2, %v4914_v27, 0.0  ;;  %v5437_v33 = vpop.eup %4915 }
 0x358   :  { %4921 = vpow2.f32 %v1087_v28  ;;  %1096 = vadd.xlane.f32.xlu0 %v1095_v31  ;;  %1102 = vadd.xlane.f32.xlu1 %v1101_v32  ;;  %v1098_v35 = vsel %vm1040_vm2, %v5437_v33, 0.0 }
 0x35a   :  { %v4918_v34 = vpop.eup %4917 }
 0x35b   :  { %v1104_v36 = vsel %vm1040_vm2, %v4918_v34, 0.0 }
 0x35c   :  { %1099 = vadd.xlane.f32.xlu0 %v1098_v35  ;;  %1105 = vadd.xlane.f32.xlu1 %v1104_v36 }
 0x35e   :  { %v4920_v37 = vpop.eup %4919 }
 0x35f   :  { %v1107_v39 = vsel %vm1040_vm2, %v4920_v37, 0.0 }
 0x360   :  { %1108 = vadd.xlane.f32.xlu1 %v1107_v39 }
 0x362   :  { %v5443_v40 = vpop.eup %4921 }
 0x363   :  { %v1110_v42 = vsel %vm1040_vm2, %v5443_v40, 0.0 }
 0x364   :  { %1111 = vadd.xlane.f32.xlu1 %v1110_v42  ;;  %v1831_v42 = vld [vmem:[#allocation8] sm:$0xff] }
 0x3dd   :  { %v1091_v43 = vpop.xlane.xlu0 %1090 }
 0x3de   :  { %4923 = vrcp.f32 %v1091_v43  ;;  %v1832_v43 = vld [vmem:[#allocation8 + $0x8] sm:$0xff] }
 0x3e1   :  { %v1094_v44 = vpop.xlane.xlu0 %1093 }
 0x3e2   :  { %4925 = vrcp.f32 %v1094_v44  ;;  %v4757_v44 = vpack.c.bf16 %v1832_v43, %v1831_v42  ;;  %v4153_v43 = vld [vmem:[%s5884_s6 + $0x30] sm:$0xff] }
 0x3e5   :  { %v1103_v45 = vpop.xlane.xlu1 %1102  ;;  %v1097_v49 = vpop.xlane.xlu0 %1096 }
 0x3e6   :  { %4927 = vrcp.f32 %v1103_v45  ;;  %v1834_v45 = vld [vmem:[#allocation8 + $0x18] sm:$0xff] }
 0x3e7   :  { %4929 = vrcp.f32 %v1097_v49  ;;  %v1920_v49 = vld [vmem:[%s5888_s10 + $0x10] sm:$0xff] }
 0x3e8   :  { %v4924_v46 = vpop.eup %4923 }
 0x3e9   :  { %v1121_v48 = vmul.f32 %v4924_v46, %v4908_v16  ;;  %v1106_v51 = vpop.xlane.xlu1 %1105  ;;  %v1100_v57 = vpop.xlane.xlu0 %1099 }
 0x3ea   :  { %4931 = vrcp.f32 %v1106_v51  ;;  %v1921_v51 = vld [vmem:[%s5888_s10 + $0x18] sm:$0xff] }
 0x3eb   :  { %4447 = vmatmul.mubr.msk.f32.vlgmr.msra.gmra.mrb[14].mxu0 %vm1040_vm2, %v1121_v48  ;;  %4933 = vrcp.f32 %v1100_v57  ;;  %v1919_v48 = vld [vmem:[%s5888_s10 + $0x8] sm:$0xff] }
 0x3ec   :  { %4450 = vmatpush3.msra.mxu0 %v443_v50  ;;  %4451 = vmatprep.mubr.msk.f32.mxu0 %vm5096_vm1, %v5095_v38  ;;  %v4926_v52 = vpop.eup %4925 }
 0x3ed   :  { %4454 = vmatprep.subr.mxu0 %v5095_v38  ;;  %v1122_v56 = vmul.f32 %v4926_v52, %v4910_v19  ;;  %v1109_v62 = vpop.xlane.xlu1 %1108  ;;  %v4769_v52 = vpack.c.bf16 %v1921_v51, %v1920_v49 }
 0x3ee   :  { %4935 = vrcp.f32 %v1109_v62 }
 0x3f0   :  { %v4928_v55 = vpop.eup %4927 }
 0x3f1   :  { %v1125_v60 = vmul.f32 %v4928_v55, %v4914_v27  ;;  %v4930_v4 = vpop.eup %4929  ;;  %v1112_v9 = vpop.xlane.xlu1 %1111  ;;  %v1922_v55 = vld [vmem:[%s5888_s10 + $0x20] sm:$0xff] }
 0x3f2   :  { %v1123_v6 = vmul.f32 %v4930_v4, %v4912_v25  ;;  %4937 = vrcp.f32 %v1112_v9  ;;  %v4753_v25 = vpack.c.bf16 %v1722_v24, %v1721_v23 }
 0x3f3   :  { %4452 = vmatmul.mubr.msk.f32.vlgmr.msra.gmra.mrb[14].mxu0 %vm1040_vm2, %v1122_v56  ;;  %4467 = vmatmul.mubr.msk.f32.vlgmr.msra.gmra.mrb[8].mxu1 %vm1040_vm2, %v1125_v60  ;;  %v1923_v56 = vld [vmem:[%s5888_s10 + $0x28] sm:$0xff] }
 0x3f4   :  { %4455 = vmatpush3.msra.mxu0 %v444_v59  ;;  %4470 = vmatpush3.msra.mxu1 %v447_v63  ;;  %v4932_v5 = vpop.eup %4931  ;;  %v4773_v57 = vpack.c.bf16 %v1923_v56, %v1922_v55 }
 0x3f5   :  { %4456 = vmatprep.mubr.msk.f32.mxu0 %vm5096_vm1, %v5095_v38  ;;  %4459 = vmatprep.subr.mxu0 %v5095_v38  ;;  %v1126_v8 = vmul.f32 %v4932_v5, %v4918_v34  ;;  %v4934_v13 = vpop.eup %4933 }
 0x3f6   :  { %4471 = vmatprep.mubr.msk.f32.mxu1 %vm5096_vm1, %v5095_v38  ;;  %4474 = vmatprep.subr.mxu1 %v5095_v38  ;;  %v1124_v16 = vmul.f32 %v4934_v13, %v5437_v33 }
 0x3f8   :  { %v4936_v3 = vpop.eup %4935 }
 0x3f9   :  { %v1127_v14 = vmul.f32 %v4936_v3, %v4920_v37 }
 0x3fb   :  { %4457 = vmatmul.mubr.msk.f32.vlgmr.msra.gmra.mrb[14].mxu0 %vm1040_vm2, %v1123_v6  ;;  %4472 = vmatmul.mubr.msk.f32.vlgmr.msra.gmra.mrb[8].mxu1 %vm1040_vm2, %v1126_v8  ;;  %v4132_v8 = vld [vmem:[#allocation7] ss:$0 sm:$0xff] }
 0x3fc   :  { %4460 = vmatpush3.msra.mxu0 %v445_v7  ;;  %4475 = vmatpush3.msra.mxu1 %v448_v12  ;;  %v4938_v17 = vpop.eup %4937 }
 0x3fd   :  { %4461 = vmatprep.mubr.msk.f32.mxu0 %vm5096_vm1, %v5095_v38  ;;  %4476 = vmatprep.mubr.msk.f32.mxu1 %vm5096_vm1, %v5095_v38  ;;  %v1128_v19 = vmul.f32 %v4938_v17, %v5443_v40 }
 0x3fe   :  { %4479 = vmatprep.subr.mxu1 %v5095_v38  ;;  %4750 = vmatprep.subr.bf16.mxu0 %v4749_v22 }
 0x403   :  { %4462 = vmatmul.mubr.msk.f32.vlgmr.msra.gmra.mrb[14].mxu0 %vm1040_vm2, %v1124_v16  ;;  %4477 = vmatmul.mubr.msk.f32.vlgmr.msra.gmra.mrb[8].mxu1 %vm1040_vm2, %v1127_v14  ;;  %v1924_v16 = vld [vmem:[%s5888_s10 + $0x30] sm:$0xff]  ;;  %v1925_v14 = vld [vmem:[%s5888_s10 + $0x38] sm:$0xff] }
 0x404   :  { %4480 = vmatpush3.msra.mxu1 %v449_v15  ;;  %4481 = vmatprep.mubr.msk.f32.mxu1 %vm5096_vm1, %v5095_v38  ;;  %v4777_v15 = vpack.c.bf16 %v1925_v14, %v1924_v16 }
 0x405   :  { %4752 = vmatpush3.bf16.msra.mxu0 %v4749_v22  ;;  %4758 = vmatprep.subr.bf16.mxu1 %v4757_v44 }
 0x406   :  { %4754 = vmatprep.subr.bf16.mxu0 %v4753_v25 }
 0x409   :  { %4756 = vmatpush3.bf16.msra.mxu0 %v4753_v25 }
 0x40b   :  { %4482 = vmatmul.mubr.msk.f32.vlgmr.msra.gmra.mrb[8].mxu1 %vm1040_vm2, %v1128_v19 }
 0x40c   :  { %4760 = vmatpush3.bf16.msra.mxu1 %v4757_v44 }
 0x4d6   :  { %v1417_v26 = vpop.f32.mrb[14].mxu0 }
 0x4d7   :  { %v4463_v27 = vpop.f32.mrb[15].mxu0  ;;  %4492 = vmatprep.mubr.msk.f32.mxu0 %vm122_vm0, %v1417_v26 }
 0x4de   :  { %v1709_v28 = vpop.f32.mrb[8].mxu1 }
 0x4df   :  { %v4483_v31 = vpop.f32.mrb[9].mxu1  ;;  %4493 = vmatmul.mubr.msk.f32.vlgmr.msra.gmra.mrb[16].mxu0 %vm122_vm0, %v1709_v28 }
 0x5b2   :  { %v4494_v32 = vpop.f32.mrb[16].mxu0 }
 0x5b3   :  { %v5500_v33 = vadd.f32 %v4494_v32, %v5250_v2  ;;  %v1795_v34 = vpop.f32.mrb[17].mxu0  ;;  %v1833_v2 = vld [vmem:[#allocation8 + $0x10] sm:$0xff] }
 0x5b4   :  { %v5503_v35 = vadd.f32 %v1795_v34, %v5248_v1  ;;  %v4761_v46 = vpack.c.bf16 %v1834_v45, %v1833_v2  ;;  %v1918_v1 = vld [vmem:[%s5888_s10] sm:$0xff]  ;;  %v4154_v2 = vld [vmem:[%s5884_s6 + $0x38] sm:$0xff] }
 0x5b5   :  { %v1808_v36 = vmul.f32 %v5500_v33, %v5500_v33  ;;  %v4765_v50 = vpack.c.bf16 %v1919_v48, %v1918_v1  ;;  %v4139_v32 = vld [vmem:[%s5882_s4 + $0x20] sm:$0xff]  ;;  %v4801_v44 = vpack.c.bf16 %v4154_v2, %v4153_v43 }
 0x5b6   :  { %v1807_v37 = vmul.f32 %v5503_v35, %v5503_v35  ;;  %4762 = vmatprep.subr.bf16.mxu1 %v4761_v46  ;;  %v4151_v34 = vld [vmem:[%s5884_s6 + $0x20] sm:$0xff] }
 0x5b7   :  { %v1812_v39 = vsel %vm122_vm0, %v1808_v36, 0.0  ;;  %4764 = vmatpush3.bf16.msra.mxu1 %v4761_v46  ;;  %4766 = vmatprep.subr.bf16.mxu0 %v4765_v50  ;;  %v4152_v36 = vld [vmem:[%s5884_s6 + $0x28] sm:$0xff]  ;;  %v4145_v45 = vld [vmem:[%s5883_s5 + $0x20] sm:$0xff] }
 0x5b8   :  { %1813 = vadd.xlane.f32.xlu1 %v1812_v39  ;;  %v1809_v40 = vsel %vm122_vm0, %v1807_v37, 0.0  ;;  %4768 = vmatpush3.bf16.msra.mxu0 %v4765_v50  ;;  %v4141_v37 = vld [vmem:[%s5882_s4 + $0x30] sm:$0xff]  ;;  %v4142_v39 = vld [vmem:[%s5882_s4 + $0x38] sm:$0xff]  ;;  %v4146_v46 = vld [vmem:[%s5883_s5 + $0x28] sm:$0xff] }
 0x5b9   :  { %1810 = vadd.xlane.f32.xlu0 %v1809_v40  ;;  %4770 = vmatprep.subr.bf16.mxu0 %v4769_v52  ;;  %v4797_v40 = vpack.c.bf16 %v4152_v36, %v4151_v34  ;;  %v4785_v42 = vpack.c.bf16 %v4142_v39, %v4141_v37  ;;  %v4789_v1 = vpack.c.bf16 %v4146_v46, %v4145_v45 }
 0x5bc   :  { %4772 = vmatpush3.bf16.msra.mxu0 %v4769_v52 }
 0x5bd   :  { %4774 = vmatprep.subr.bf16.mxu0 %v4773_v57 }
 0x5c0   :  { %4776 = vmatpush3.bf16.msra.mxu0 %v4773_v57 }
 0x5c1   :  { %4778 = vmatprep.subr.bf16.mxu0 %v4777_v15 }
 0x5c4   :  { %4780 = vmatpush3.bf16.msra.mxu0 %v4777_v15 }
 0x5c5   :  { %4798 = vmatprep.subr.bf16.mxu0 %v4797_v40 }
 0x645   :  { %v1814_v59 = vpop.xlane.xlu1 %1813 }
 0x646   :  { %v1816_v60 = vmul.f32 0.03125, %v1814_v59  ;;  %v1811_v62 = vpop.xlane.xlu0 %1810  ;;  %v4138_v59 = vld [vmem:[%s5881_s3 + $0x1] ss:$0 sm:$0xff] }
 0x647   :  { %v1815_v63 = vmul.f32 0.03125, %v1811_v62 }
 0x648   :  { %v1818_v4 = vadd.f32 1e-06, %v1816_v60 }
 0x649   :  { %v1817_v5 = vadd.f32 1e-06, %v1815_v63  ;;  %v4147_v63 = vld [vmem:[%s5883_s5 + $0x30] sm:$0xff] }
 0x64a   :  { %4939 = vrsqrt.f32 %v1818_v4  ;;  %v4148_v4 = vld [vmem:[%s5883_s5 + $0x38] sm:$0xff] }
 0x64b   :  { %4941 = vrsqrt.f32 %v1817_v5 }
 0x654   :  { %v4940_v6 = vpop.eup %4939 }
 0x655   :  { %v4942_v7 = vpop.eup %4941  ;;  %v1822_v9 = vmul.f32 %v4940_v6, %v5500_v33 }
 0x656   :  { %v1821_v12 = vmul.f32 %v4942_v7, %v5503_v35  ;;  %v4793_v7 = vpack.c.bf16 %v4148_v4, %v4147_v63 }
 0x657   :  { %v1830_v3 = vmul.f32 %v4132_v8, %v1822_v9 }
 0x658   :  { %v1829_v13 = vmul.f32 %v4132_v8, %v1821_v12 }
 0x65a   :  { %4503 = vmatprep.mubr.msk.f32.mxu1 %vm122_vm0, %v1829_v13 }
 0x65b   :  { %4504 = vmatmul.mubr.msk.f32.vlgmr.msra.gmra.mrb[10].mxu1 %vm122_vm0, %v1830_v3 }
 0x72e   :  { %v4505_v17 = vpop.f32.mrb[10].mxu1 }
 0x72f   :  { %v1907_v19 = vpop.f32.mrb[11].mxu1  ;;  %v1917_v0 = vmax.f32 %v4505_v17, 0.0 }
 0x730   :  { %v1916_v20 = vmax.f32 %v1907_v19, 0.0 }
 0x732   :  { %4522 = vmatprep.mubr.msk.f32.mxu0 %vm1926_vm3, %v1916_v20 }
 0x733   :  { %4523 = vmatmul.mubr.msk.f32.vlgmr.msra.gmra.mrb[18].mxu0 %vm1926_vm3, %v1917_v0 }
 0x734   :  { %4800 = vmatpush3.bf16.msra.mxu0 %v4797_v40 }
 0x735   :  { %4802 = vmatprep.subr.bf16.mxu0 %v4801_v44 }
 0x738   :  { %4804 = vmatpush3.bf16.msra.mxu0 %v4801_v44 }
 0x739   :  { %4568 = vmatprep.subr.mxu0 %v5095_v38 }
 0x806   :  { %v4524_v22 = vpop.f32.mrb[18].mxu0 }
 0x807   :  { %v5542_v23 = vadd.f32 %v4524_v22, %v5500_v33  ;;  %v1999_v24 = vpop.f32.mrb[19].mxu0  ;;  %v4140_v33 = vld [vmem:[%s5882_s4 + $0x28] sm:$0xff] }
 0x808   :  { %v5545_v25 = vadd.f32 %v1999_v24, %v5503_v35  ;;  %v4781_v35 = vpack.c.bf16 %v4140_v33, %v4139_v32 }
 0x809   :  { %v2013_v26 = vmul.f32 %v5542_v23, %v5542_v23 }
 0x80a   :  { %v2012_v27 = vmul.f32 %v5545_v25, %v5545_v25  ;;  %4782 = vmatprep.subr.bf16.mxu1 %v4781_v35 }
 0x80b   :  { %v2017_v28 = vsel %vm122_vm0, %v2013_v26, 0.0  ;;  %4784 = vmatpush3.bf16.msra.mxu1 %v4781_v35 }
 0x80c   :  { %2018 = vadd.xlane.f32.xlu1 %v2017_v28  ;;  %v2014_v31 = vsel %vm122_vm0, %v2012_v27, 0.0  ;;  %4786 = vmatprep.subr.bf16.mxu1 %v4785_v42 }
 0x80d   :  { %2015 = vadd.xlane.f32.xlu0 %v2014_v31 }
 0x80f   :  { %4788 = vmatpush3.bf16.msra.mxu1 %v4785_v42 }
 0x810   :  { %4790 = vmatprep.subr.bf16.mxu1 %v4789_v1 }
 0x899   :  { %v2019_v48 = vpop.xlane.xlu1 %2018 }
 0x89a   :  { %v2021_v49 = vmul.f32 0.03125, %v2019_v48  ;;  %v2016_v50 = vpop.xlane.xlu0 %2015 }
 0x89b   :  { %v2020_v51 = vmul.f32 0.03125, %v2016_v50 }
 0x89c   :  { %v2023_v52 = vadd.f32 1e-06, %v2021_v49 }
 0x89d   :  { %v2022_v55 = vadd.f32 1e-06, %v2020_v51 }
 0x89e   :  { %4943 = vrsqrt.f32 %v2023_v52 }
 0x89f   :  { %4945 = vrsqrt.f32 %v2022_v55 }
 0x8a8   :  { %v4944_v56 = vpop.eup %4943 }
 0x8a9   :  { %v4946_v57 = vpop.eup %4945  ;;  %v2027_v60 = vmul.f32 %v4944_v56, %v5542_v23 }
 0x8aa   :  { %v2026_v62 = vmul.f32 %v4946_v57, %v5545_v25 }
 0x8ab   :  { %v2035_v6 = vmul.f32 %v4138_v59, %v2027_v60 }
 0x8ac   :  { %v2034_v5 = vmul.f32 %v4138_v59, %v2026_v62 }
 0x8ae   :  { %4533 = vmatprep.mubr.msk.f32.mxu1 %vm122_vm0, %v2034_v5  ;;  %4555 = vmatprep.mubr.msk.f32.mxu0 %vm122_vm0, %v2034_v5 }
 0x8af   :  { %4534 = vmatmul.mubr.msk.f32.vlgmr.msra.gmra.mrb[12].mxu1 %vm122_vm0, %v2035_v6  ;;  %4556 = vmatmul.mubr.msk.f32.vlgmr.msra.gmra.mrb[20].mxu0 %vm122_vm0, %v2035_v6 }
 0x8b0   :  { %4792 = vmatpush3.bf16.msra.mxu1 %v4789_v1  ;;  %4544 = vmatprep.mubr.msk.f32.mxu1 %vm122_vm0, %v2034_v5 }
 0x8b1   :  { %4794 = vmatprep.subr.bf16.mxu1 %v4793_v7  ;;  %4570 = vmatprep.mubr.msk.f32.mxu0 %vm5096_vm1, %v5095_v38 }
 0x8b4   :  { %4796 = vmatpush3.bf16.msra.mxu1 %v4793_v7 }
 0x8b5   :  { %4558 = vmatprep.subr.mxu1 %v5095_v38 }
 0x8b7   :  { %4545 = vmatmul.mubr.msk.f32.vlgmr.msra.gmra.mrb[14].mxu1 %vm122_vm0, %v2035_v6 }
 0x8b8   :  { %4560 = vmatprep.mubr.msk.f32.mxu1 %vm5096_vm1, %v5095_v38 }
 0x982   :  { %v4535_v8 = vpop.f32.mrb[12].mxu1  ;;  %v5606_v9 = vpop.f32.mrb[20].mxu0 }
 0x983   :  { %v2113_v12 = vpop.f32.mrb[13].mxu1  ;;  %v5608_v13 = vpop.f32.mrb[21].mxu0  ;;  %v2286_v17 = vmul.f32 %v4535_v8, %v5311_v53  ;;  %v2288_v20 = vmul.f32 %v4535_v8, %v5317_v58  ;;  %v2287_v24 = vmul.f32 %v4535_v8, %v5313_v54  ;;  %v2289_v26 = vmul.f32 %v4535_v8, %v5323_v61 }
 0x984   :  { %v2282_v14 = vmul.f32 %v2113_v12, %v5311_v53  ;;  %v2284_v15 = vmul.f32 %v2113_v12, %v5317_v58  ;;  %v2283_v19 = vmul.f32 %v2113_v12, %v5313_v54  ;;  %v2285_v0 = vmul.f32 %v2113_v12, %v5323_v61 }
 0x985   :  { %v2290_v22 = vmul.f32 %v5608_v13, %v5311_v53  ;;  %v2294_v27 = vmul.f32 %v5606_v9, %v5311_v53 }
 0x98a   :  { %v4546_v3 = vpop.f32.mrb[14].mxu1 }
 0x98b   :  { %v2193_v16 = vpop.f32.mrb[15].mxu1 }
 0x98c   :  { %4559 = vmatpush3.xpose.msk.msra.mxu1 %vm122_vm0, %v2193_v16  ;;  %4569 = vmatpush3.xpose.msk.msra.mxu0 %vm122_vm0, %v2193_v16 }
 0x98d   :  { %4563 = vmatprep.subr.mxu1 %v5095_v38  ;;  %4578 = vmatprep.subr.mxu0 %v5095_v38 }
 0x98f   :  { %4561 = vmatmul.mubr.msk.f32.vlgmr.msra.gmra.mrb[16].mxu1 %vm122_vm0, %v2282_v14  ;;  %4571 = vmatmul.mubr.msk.f32.vlgmr.msra.gmra.mrb[22].mxu0 %vm122_vm0, %v2284_v15 }
 0x990   :  { %4564 = vmatpush3.xpose.msk.msra.mxu1 %vm122_vm0, %v2193_v16  ;;  %4579 = vmatpush3.xpose.msk.msra.mxu0 %vm122_vm0, %v4546_v3 }
 0x991   :  { %4565 = vmatprep.mubr.msk.f32.mxu1 %vm5096_vm1, %v5095_v38  ;;  %4580 = vmatprep.mubr.msk.f32.mxu0 %vm5096_vm1, %v5095_v38 }
 0x992   :  { %4573 = vmatprep.subr.mxu1 %v5095_v38  ;;  %4588 = vmatprep.subr.mxu0 %v5095_v38 }
 0x993   :  { %4566 = vmatmul.mubr.msk.f32.vlgmr.msra.gmra.mrb[18].mxu1 %vm122_vm0, %v2283_v19  ;;  %4581 = vmatmul.mubr.msk.f32.vlgmr.msra.gmra.mrb[24].mxu0 %vm122_vm0, %v2286_v17 }
 0x994   :  { %4574 = vmatpush3.xpose.msk.msra.mxu1 %vm122_vm0, %v2193_v16  ;;  %4589 = vmatpush3.xpose.msk.msra.mxu0 %vm122_vm0, %v4546_v3 }
 0x995   :  { %4575 = vmatprep.mubr.msk.f32.mxu1 %vm5096_vm1, %v5095_v38  ;;  %4590 = vmatprep.mubr.msk.f32.mxu0 %vm5096_vm1, %v5095_v38 }
 0x996   :  { %4583 = vmatprep.subr.mxu1 %v5095_v38  ;;  %4598 = vmatprep.subr.mxu0 %v5095_v38 }
 0x997   :  { %4576 = vmatmul.mubr.msk.f32.vlgmr.msra.gmra.mrb[20].mxu1 %vm122_vm0, %v2285_v0  ;;  %4591 = vmatmul.mubr.msk.f32.vlgmr.msra.gmra.mrb[26].mxu0 %vm122_vm0, %v2288_v20 }
 0x998   :  { %4584 = vmatpush3.xpose.msk.msra.mxu1 %vm122_vm0, %v4546_v3  ;;  %4599 = vmatpush3.msra.mxu0 %v2290_v22 }
 0x999   :  { %4585 = vmatprep.mubr.msk.f32.mxu1 %vm5096_vm1, %v5095_v38  ;;  %4593 = vmatprep.subr.mxu1 %v5095_v38 }
 0x99a   :  { %4600 = vmatprep.mubr.msk.f32.mxu0 %vm5096_vm1, %v5095_v38  ;;  %4603 = vmatprep.subr.mxu0 %v5095_v38 }
 0x99b   :  { %4586 = vmatmul.mubr.msk.f32.vlgmr.msra.gmra.mrb[22].mxu1 %vm122_vm0, %v2287_v24 }
 0x99c   :  { %4594 = vmatpush3.xpose.msk.msra.mxu1 %vm122_vm0, %v4546_v3  ;;  %4595 = vmatprep.mubr.msk.f32.mxu1 %vm5096_vm1, %v5095_v38 }
 0x99d   :  { %4618 = vmatprep.subr.mxu1 %v5095_v38 }
 0x99f   :  { %4596 = vmatmul.mubr.msk.f32.vlgmr.msra.gmra.mrb[24].mxu1 %vm122_vm0, %v2289_v26 }
 0x9a0   :  { %4619 = vmatpush3.msra.mxu1 %v2294_v27  ;;  %4620 = vmatprep.mubr.msk.f32.mxu1 %vm5096_vm1, %v5095_v38 }
 0x9a1   :  { %4623 = vmatprep.subr.mxu1 %v5095_v38 }
 0xa62   :  { %v2370_v28 = vpop.f32.mrb[16].mxu1  ;;  %v2516_v31 = vpop.f32.mrb[22].mxu0 }
 0xa63   :  { %v2371_v32 = vadd.f32 %v2370_v28, %v5380_v10  ;;  %v4562_v33 = vpop.f32.mrb[17].mxu1  ;;  %v4572_v34 = vpop.f32.mrb[23].mxu0  ;;  %v2517_v43 = vadd.f32 %v2516_v31, %v5392_v18 }
 0xa65   :  { %v2888_v35 = vsel %vm1040_vm2, %v2371_v32, -inf }
 0xa66   :  { %v2665_v36 = vpop.f32.mrb[24].mxu0  ;;  %2889 = vmax.xlane.f32.xlu0 %v2888_v35  ;;  %v2443_v37 = vpop.f32.mrb[18].mxu1 }
 0xa67   :  { %v2666_v53 = vadd.f32 %v2665_v36, %v5407_v29  ;;  %v2444_v39 = vadd.f32 %v2443_v37, %v5385_v11  ;;  %v4567_v40 = vpop.f32.mrb[19].mxu1  ;;  %v4582_v42 = vpop.f32.mrb[25].mxu0  ;;  %v2894_v29 = vsel %vm1040_vm2, %v2517_v43, -inf }
 0xa69   :  { %v2900_v2 = vsel %vm1040_vm2, %v2666_v53, -inf  ;;  %v2891_v44 = vsel %vm1040_vm2, %v2444_v39, -inf }
 0xa6a   :  { %2901 = vmax.xlane.f32.xlu1 %v2900_v2  ;;  %v2811_v10 = vpop.f32.mrb[26].mxu0  ;;  %2892 = vmax.xlane.f32.xlu0 %v2891_v44  ;;  %v2589_v45 = vpop.f32.mrb[20].mxu1 }
 0xa6b   :  { %v4577_v46 = vpop.f32.mrb[21].mxu1  ;;  %v4592_v1 = vpop.f32.mrb[27].mxu0  ;;  %v2590_v48 = vadd.f32 %v2589_v45, %v5399_v21  ;;  %v2812_v18 = vadd.f32 %v2811_v10, %v5421_v41 }
 0xa6d   :  { %v2897_v51 = vsel %vm1040_vm2, %v2590_v48, -inf  ;;  %v2906_v21 = vsel %vm1040_vm2, %v2812_v18, -inf }
 0xa6e   :  { %2895 = vmax.xlane.f32.xlu0 %v2894_v29  ;;  %v2738_v11 = vpop.f32.mrb[22].mxu1 }
 0xa6f   :  { %v2739_v49 = vadd.f32 %v2738_v11, %v5412_v30  ;;  %v4587_v50 = vpop.f32.mrb[23].mxu1 }
 0xa71   :  { %v2903_v52 = vsel %vm1040_vm2, %v2739_v49, -inf }
 0xa72   :  { %2898 = vmax.xlane.f32.xlu0 %v2897_v51  ;;  %2904 = vmax.xlane.f32.xlu1 %v2903_v52  ;;  %v2884_v55 = vpop.f32.mrb[24].mxu1 }
 0xa73   :  { %v4597_v56 = vpop.f32.mrb[25].mxu1  ;;  %v2885_v57 = vadd.f32 %v2884_v55, %v5428_v47  ;;  %v2295_v55 = vmul.f32 %v5606_v9, %v5313_v54 }
 0xa75   :  { %v2909_v59 = vsel %vm1040_vm2, %v2885_v57, -inf }
 0xa76   :  { %2907 = vmax.xlane.f32.xlu1 %v2906_v21 }
 0xa7a   :  { %2910 = vmax.xlane.f32.xlu1 %v2909_v59  ;;  %v2292_v59 = vmul.f32 %v5608_v13, %v5317_v58 }
 0xaf3   :  { %v2890_v30 = vpop.xlane.xlu0 %2889 }
 0xaf4   :  { %v2912_v60 = vsub.f32 %v2371_v32, %v2890_v30 }
 0xaf6   :  { %v2920_v62 = vmul.f32 1.442695, %v2912_v60  ;;  %v4181_v60 = vld [vmem:[%s5885_s7 + $0x20] sm:$0xff] }
 0xaf7   :  { %v2902_v41 = vpop.xlane.xlu1 %2901  ;;  %v2893_v63 = vpop.xlane.xlu0 %2892 }
 0xaf8   :  { %4947 = vpow2.f32 %v2920_v62  ;;  %v2916_v4 = vsub.f32 %v2666_v53, %v2902_v41  ;;  %v2913_v5 = vsub.f32 %v2444_v39, %v2893_v63  ;;  %v4182_v62 = vld [vmem:[%s5885_s7 + $0x28] sm:$0xff] }
 0xafa   :  { %v2928_v6 = vmul.f32 1.442695, %v2916_v4  ;;  %v2922_v7 = vmul.f32 1.442695, %v2913_v5  ;;  %v2296_v4 = vmul.f32 %v5606_v9, %v5317_v58 }
 0xafb   :  { %v2896_v8 = vpop.xlane.xlu0 %2895 }
 0xafc   :  { %4949 = vpow2.f32 %v2928_v6  ;;  %v2914_v12 = vsub.f32 %v2517_v43, %v2896_v8  ;;  %v4805_v6 = vpack.c.bf16 %v4182_v62, %v4181_v60 }
 0xafd   :  { %4951 = vpow2.f32 %v2922_v7  ;;  %v2293_v7 = vmul.f32 %v5608_v13, %v5323_v61 }
 0xafe   :  { %v2924_v47 = vmul.f32 1.442695, %v2914_v12 }
 0xaff   :  { %v2899_v3 = vpop.xlane.xlu0 %2898  ;;  %v2905_v16 = vpop.xlane.xlu1 %2904 }
 0xb00   :  { %4953 = vpow2.f32 %v2924_v47  ;;  %v2915_v14 = vsub.f32 %v2590_v48, %v2899_v3  ;;  %v2917_v15 = vsub.f32 %v2739_v49, %v2905_v16  ;;  %v2291_v49 = vmul.f32 %v5608_v13, %v5313_v54 }
 0xb01   :  { %v2297_v13 = vmul.f32 %v5606_v9, %v5323_v61  ;;  %v4183_v61 = vld [vmem:[%s5885_s7 + $0x30] sm:$0xff]  ;;  %v4184_v9 = vld [vmem:[%s5885_s7 + $0x38] sm:$0xff] }
 0xb02   :  { %v4948_v17 = vpop.eup %4947  ;;  %v2926_v19 = vmul.f32 1.442695, %v2915_v14  ;;  %v2930_v20 = vmul.f32 1.442695, %v2917_v15  ;;  %v4809_v14 = vpack.c.bf16 %v4184_v9, %v4183_v61  ;;  %v3905_v61 = vld [vmem:[%s5890_s12 + $0x18] sm:$0xff] }
 0xb03   :  { %v2908_v0 = vpop.xlane.xlu1 %2907  ;;  %v2936_v22 = vsel %vm1040_vm2, %v4948_v17, 0.0 }
 0xb04   :  { %4955 = vpow2.f32 %v2926_v19  ;;  %v2918_v24 = vsub.f32 %v2812_v18, %v2908_v0  ;;  %2937 = vadd.xlane.f32.xlu0 %v2936_v22 }
 0xb05   :  { %4957 = vpow2.f32 %v2930_v20 }
 0xb06   :  { %v4950_v26 = vpop.eup %4949  ;;  %v2932_v27 = vmul.f32 1.442695, %v2918_v24 }
 0xb07   :  { %v4952_v28 = vpop.eup %4951  ;;  %v2911_v31 = vpop.xlane.xlu1 %2910  ;;  %v2948_v32 = vsel %vm1040_vm2, %v4950_v26, 0.0 }
 0xb08   :  { %4959 = vpow2.f32 %v2932_v27  ;;  %v2919_v33 = vsub.f32 %v2885_v57, %v2911_v31  ;;  %v2939_v34 = vsel %vm1040_vm2, %v4952_v28, 0.0  ;;  %2949 = vadd.xlane.f32.xlu1 %v2948_v32 }
 0xb09   :  { %2940 = vadd.xlane.f32.xlu0 %v2939_v34  ;;  %v3682_v34 = vld [vmem:[#allocation8 + $0x28] sm:$0xff] }
 0xb0a   :  { %v4954_v35 = vpop.eup %4953  ;;  %v2934_v36 = vmul.f32 1.442695, %v2919_v33  ;;  %v3681_v33 = vld [vmem:[#allocation8 + $0x20] sm:$0xff] }
 0xb0b   :  { %v2942_v37 = vsel %vm1040_vm2, %v4954_v35, 0.0 }
 0xb0c   :  { %4961 = vpow2.f32 %v2934_v36  ;;  %v3684_v36 = vld [vmem:[#allocation8 + $0x38] sm:$0xff] }
 0xb0d   :  { %2943 = vadd.xlane.f32.xlu0 %v2942_v37 }
 0xb0e   :  { %v5684_v53 = vpop.eup %4955 }
 0xb0f   :  { %v4958_v39 = vpop.eup %4957  ;;  %v2945_v40 = vsel %vm1040_vm2, %v5684_v53, 0.0 }
 0xb10   :  { %v2951_v42 = vsel %vm1040_vm2, %v4958_v39, 0.0 }
 0xb11   :  { %2946 = vadd.xlane.f32.xlu0 %v2945_v40  ;;  %2952 = vadd.xlane.f32.xlu1 %v2951_v42  ;;  %v4193_v42 = vld [vmem:[%s5888_s10 + $0x58] sm:$0xff] }
 0xb12   :  { %v4960_v43 = vpop.eup %4959 }
 0xb13   :  { %v2954_v2 = vsel %vm1040_vm2, %v4960_v43, 0.0 }
 0xb15   :  { %2955 = vadd.xlane.f32.xlu1 %v2954_v2  ;;  %v4194_v2 = vld [vmem:[%s5888_s10 + $0x60] sm:$0xff] }
 0xb16   :  { %v5690_v44 = vpop.eup %4961 }
 0xb17   :  { %v2957_v10 = vsel %vm1040_vm2, %v5690_v44, 0.0 }
 0xb19   :  { %2958 = vadd.xlane.f32.xlu1 %v2957_v10 }
 0xb91   :  { %v2938_v45 = vpop.xlane.xlu0 %2937 }
 0xb92   :  { %4963 = vrcp.f32 %v2938_v45 }
 0xb95   :  { %v2950_v46 = vpop.xlane.xlu1 %2949 }
 0xb96   :  { %v2941_v1 = vpop.xlane.xlu0 %2940  ;;  %4965 = vrcp.f32 %v2950_v46 }
 0xb97   :  { %4967 = vrcp.f32 %v2941_v1 }
 0xb9a   :  { %v2944_v29 = vpop.xlane.xlu0 %2943 }
 0xb9b   :  { %4969 = vrcp.f32 %v2944_v29 }
 0xb9c   :  { %v4964_v48 = vpop.eup %4963 }
 0xb9d   :  { %v2968_v11 = vmul.f32 %v4964_v48, %v4948_v17 }
 0xb9e   :  { %v2953_v50 = vpop.xlane.xlu1 %2952  ;;  %v2947_v21 = vpop.xlane.xlu0 %2946 }
 0xb9f   :  { %4601 = vmatmul.mubr.msk.f32.vlgmr.msra.gmra.mrb[28].mxu0 %vm1040_vm2, %v2968_v11  ;;  %4971 = vrcp.f32 %v2953_v50 }
 0xba0   :  { %v4966_v18 = vpop.eup %4965  ;;  %4604 = vmatpush3.msra.mxu0 %v2291_v49  ;;  %4605 = vmatprep.mubr.msk.f32.mxu0 %vm5096_vm1, %v5095_v38 }
 0xba1   :  { %v2972_v51 = vmul.f32 %v4966_v18, %v4950_v26  ;;  %4608 = vmatprep.subr.mxu0 %v5095_v38  ;;  %v4968_v52 = vpop.eup %4967  ;;  %v4187_v18 = vld [vmem:[#allocation7 + $0x1] ss:$0 sm:$0xff] }
 0xba2   :  { %v2956_v56 = vpop.xlane.xlu1 %2955  ;;  %v2969_v57 = vmul.f32 %v4968_v52, %v4952_v28 }
 0xba3   :  { %4621 = vmatmul.mubr.msk.f32.vlgmr.msra.gmra.mrb[26].mxu1 %vm1040_vm2, %v2972_v51  ;;  %4973 = vrcp.f32 %v2956_v56 }
 0xba4   :  { %4624 = vmatpush3.msra.mxu1 %v2295_v55  ;;  %4625 = vmatprep.mubr.msk.f32.mxu1 %vm5096_vm1, %v5095_v38  ;;  %4975 = vrcp.f32 %v2947_v21  ;;  %v4197_v21 = vld [vmem:[%s5888_s10 + $0x78] sm:$0xff] }
 0xba5   :  { %4628 = vmatprep.subr.mxu1 %v5095_v38  ;;  %v4970_v54 = vpop.eup %4969 }
 0xba6   :  { %v2959_v63 = vpop.xlane.xlu1 %2958  ;;  %v2970_v5 = vmul.f32 %v4970_v54, %v4954_v35  ;;  %v4813_v35 = vpack.c.bf16 %v3682_v34, %v3681_v33 }
 0xba7   :  { %4606 = vmatmul.mubr.msk.f32.vlgmr.msra.gmra.mrb[28].mxu0 %vm1040_vm2, %v2969_v57  ;;  %4977 = vrcp.f32 %v2959_v63  ;;  %v4196_v57 = vld [vmem:[%s5888_s10 + $0x70] sm:$0xff] }
 0xba8   :  { %4609 = vmatpush3.msra.mxu0 %v2292_v59  ;;  %4610 = vmatprep.mubr.msk.f32.mxu0 %vm5096_vm1, %v5095_v38  ;;  %v4833_v59 = vpack.c.bf16 %v4197_v21, %v4196_v57  ;;  %v3998_v57 = vld [vmem:[%s5892_s14 + $0x40] sm:$0xff]  ;;  %v3999_v21 = vld [vmem:[%s5892_s14 + $0x48] sm:$0xff] }
 0xba9   :  { %4613 = vmatprep.subr.mxu0 %v5095_v38  ;;  %v4972_v30 = vpop.eup %4971 }
 0xbaa   :  { %v2973_v41 = vmul.f32 %v4972_v30, %v4958_v39  ;;  %v4192_v39 = vld [vmem:[%s5888_s10 + $0x50] sm:$0xff] }
 0xbac   :  { %4626 = vmatmul.mubr.msk.f32.vlgmr.msra.gmra.mrb[26].mxu1 %vm1040_vm2, %v2973_v41 }
 0xbad   :  { %4629 = vmatpush3.msra.mxu1 %v2296_v4  ;;  %4630 = vmatprep.mubr.msk.f32.mxu1 %vm5096_vm1, %v5095_v38  ;;  %v4974_v8 = vpop.eup %4973 }
 0xbae   :  { %4633 = vmatprep.subr.mxu1 %v5095_v38  ;;  %v4976_v58 = vpop.eup %4975  ;;  %v2974_v12 = vmul.f32 %v4974_v8, %v4960_v43  ;;  %v4825_v43 = vpack.c.bf16 %v4193_v42, %v4192_v39 }
 0xbaf   :  { %4611 = vmatmul.mubr.msk.f32.vlgmr.msra.gmra.mrb[28].mxu0 %vm1040_vm2, %v2970_v5  ;;  %v2971_v47 = vmul.f32 %v4976_v58, %v5684_v53  ;;  %v4191_v53 = vld [vmem:[%s5888_s10 + $0x48] sm:$0xff] }
 0xbb0   :  { %4614 = vmatpush3.msra.mxu0 %v2293_v7  ;;  %4615 = vmatprep.mubr.msk.f32.mxu0 %vm5096_vm1, %v5095_v38 }
 0xbb1   :  { %4806 = vmatprep.subr.bf16.mxu0 %v4805_v6  ;;  %v4978_v3 = vpop.eup %4977 }
 0xbb2   :  { %v2975_v16 = vmul.f32 %v4978_v3, %v5690_v44  ;;  %v4195_v44 = vld [vmem:[%s5888_s10 + $0x68] sm:$0xff]  ;;  %v5098_v3 = vmov 0.0|0.0  }
 0xbb3   :  { %v4829_v10 = vpack.c.bf16 %v4195_v44, %v4194_v2  ;;  %v3990_v44 = vld [vmem:[%s5892_s14] sm:$0xff] }
 0xbb4   :  { %4631 = vmatmul.mubr.msk.f32.vlgmr.msra.gmra.mrb[26].mxu1 %vm1040_vm2, %v2974_v12  ;;  %v3902_v12 = vld [vmem:[%s5890_s12] sm:$0xff] }
 0xbb5   :  { %4634 = vmatpush3.msra.mxu1 %v2297_v13  ;;  %4635 = vmatprep.mubr.msk.f32.mxu1 %vm5096_vm1, %v5095_v38  ;;  %v3903_v13 = vld [vmem:[%s5890_s12 + $0x8] sm:$0xff] }
 0xbb6   :  { %4814 = vmatprep.subr.bf16.mxu1 %v4813_v35 }
 0xbb7   :  { %4616 = vmatmul.mubr.msk.f32.vlgmr.msra.gmra.mrb[28].mxu0 %vm1040_vm2, %v2971_v47  ;;  %v3904_v47 = vld [vmem:[%s5890_s12 + $0x10] sm:$0xff] }
 0xbb8   :  { %4808 = vmatpush3.bf16.msra.mxu0 %v4805_v6  ;;  %v4841_v9 = vpack.c.bf16 %v3905_v61, %v3904_v47  ;;  %v4203_v47 = vld [vmem:[#allocation2] ss:$0 sm:$0xff] }
 0xbb9   :  { %4810 = vmatprep.subr.bf16.mxu0 %v4809_v14 }
 0xbbc   :  { %4636 = vmatmul.mubr.msk.f32.vlgmr.msra.gmra.mrb[26].mxu1 %vm1040_vm2, %v2975_v16  ;;  %4812 = vmatpush3.bf16.msra.mxu0 %v4809_v14  ;;  %v4838_v16 = vpack.c.bf16 %v3903_v13, %v3902_v12 }
 0xbbd   :  { %4816 = vmatpush3.bf16.msra.mxu1 %v4813_v35 }
 0xc8a   :  { %v3264_v15 = vpop.f32.mrb[28].mxu0 }
 0xc8b   :  { %v4617_v17 = vpop.f32.mrb[29].mxu0  ;;  %4646 = vmatprep.mubr.msk.f32.mxu0 %vm122_vm0, %v3264_v15 }
 0xc8f   :  { %v3556_v19 = vpop.f32.mrb[26].mxu1 }
 0xc90   :  { %v4637_v20 = vpop.f32.mrb[27].mxu1  ;;  %4647 = vmatmul.mubr.msk.f32.vlgmr.msra.gmra.mrb[30].mxu0 %vm122_vm0, %v3556_v19 }
 0xd63   :  { %v4648_v0 = vpop.f32.mrb[30].mxu0 }
 0xd64   :  { %v5747_v22 = vadd.f32 %v4648_v0, %v5542_v23  ;;  %v3643_v24 = vpop.f32.mrb[31].mxu0  ;;  %v3683_v23 = vld [vmem:[#allocation8 + $0x30] sm:$0xff] }
 0xd65   :  { %v5750_v26 = vadd.f32 %v3643_v24, %v5545_v25  ;;  %v4817_v37 = vpack.c.bf16 %v3684_v36, %v3683_v23  ;;  %v4190_v25 = vld [vmem:[%s5888_s10 + $0x40] sm:$0xff] }
 0xd66   :  { %v3657_v27 = vmul.f32 %v5747_v22, %v5747_v22  ;;  %v4821_v40 = vpack.c.bf16 %v4191_v53, %v4190_v25  ;;  %v4200_v24 = vld [vmem:[%s5889_s11] ss:$0 sm:$0xff] }
 0xd67   :  { %v3656_v28 = vmul.f32 %v5750_v26, %v5750_v26  ;;  %4818 = vmatprep.subr.bf16.mxu1 %v4817_v37 }
 0xd68   :  { %v3661_v31 = vsel %vm122_vm0, %v3657_v27, 0.0  ;;  %4820 = vmatpush3.bf16.msra.mxu1 %v4817_v37  ;;  %4822 = vmatprep.subr.bf16.mxu0 %v4821_v40 }
 0xd69   :  { %3662 = vadd.xlane.f32.xlu1 %v3661_v31  ;;  %v3658_v32 = vsel %vm122_vm0, %v3656_v28, 0.0  ;;  %4824 = vmatpush3.bf16.msra.mxu0 %v4821_v40 }
 0xd6a   :  { %3659 = vadd.xlane.f32.xlu0 %v3658_v32  ;;  %4826 = vmatprep.subr.bf16.mxu0 %v4825_v43 }
 0xd6b   :  { %4837 = vmatprep.subr.bf16.mxu1 %v5098_v3 }
 0xd6d   :  { %4828 = vmatpush3.bf16.msra.mxu0 %v4825_v43 }
 0xd6e   :  { %4830 = vmatprep.subr.bf16.mxu0 %v4829_v10 }
 0xd71   :  { %4832 = vmatpush3.bf16.msra.mxu0 %v4829_v10  ;;  %v3991_v10 = vld [vmem:[%s5892_s14 + $0x8] sm:$0xff] }
 0xd72   :  { %4834 = vmatprep.subr.bf16.mxu0 %v4833_v59 }
 0xd75   :  { %4836 = vmatpush3.bf16.msra.mxu0 %v4833_v59  ;;  %v4856_v59 = vpack.c.bf16 %v3999_v21, %v3998_v57 }
 0xdf6   :  { %v3663_v45 = vpop.xlane.xlu1 %3662 }
 0xdf7   :  { %v3665_v46 = vmul.f32 0.03125, %v3663_v45  ;;  %v3660_v1 = vpop.xlane.xlu0 %3659 }
 0xdf8   :  { %v3664_v48 = vmul.f32 0.03125, %v3660_v1 }
 0xdf9   :  { %v3667_v29 = vadd.f32 1e-06, %v3665_v46 }
 0xdfa   :  { %v3666_v11 = vadd.f32 1e-06, %v3664_v48  ;;  %v4844_v48 = vpack.c.bf16 %v3991_v10, %v3990_v44 }
 0xdfb   :  { %4979 = vrsqrt.f32 %v3667_v29  ;;  %v3992_v29 = vld [vmem:[%s5892_s14 + $0x10] sm:$0xff] }
 0xdfc   :  { %4981 = vrsqrt.f32 %v3666_v11  ;;  %v3993_v11 = vld [vmem:[%s5892_s14 + $0x18] sm:$0xff] }
 0xe05   :  { %v4980_v49 = vpop.eup %4979 }
 0xe06   :  { %v4982_v50 = vpop.eup %4981  ;;  %v3671_v51 = vmul.f32 %v4980_v49, %v5747_v22 }
 0xe07   :  { %v3670_v52 = vmul.f32 %v4982_v50, %v5750_v26  ;;  %v4847_v50 = vpack.c.bf16 %v3993_v11, %v3992_v29 }
 0xe08   :  { %v3679_v56 = vmul.f32 %v4187_v18, %v3671_v51  ;;  %v3995_v51 = vld [vmem:[%s5892_s14 + $0x28] sm:$0xff] }
 0xe09   :  { %v3678_v55 = vmul.f32 %v4187_v18, %v3670_v52  ;;  %v3994_v18 = vld [vmem:[%s5892_s14 + $0x20] sm:$0xff] }
 0xe0a   :  { %v4850_v52 = vpack.c.bf16 %v3995_v51, %v3994_v18 }
 0xe0b   :  { %4657 = vmatprep.mubr.msk.f32.mxu1 %vm122_vm0, %v3678_v55  ;;  %v3996_v55 = vld [vmem:[%s5892_s14 + $0x30] sm:$0xff] }
 0xe0c   :  { %4658 = vmatmul.mubr.msk.f32.vlgmr.msra.gmra.mrb[28].mxu1 %vm122_vm0, %v3679_v56 }
 0xe0d   :  { %4687 = vmatprep.mubr.msk.f32.mxu1 %vm5096_vm1, %v5095_v38  ;;  %4839 = vmatpush3.bf16.msra.mxu1 %v4838_v16 }
 0xe0e   :  { %4840 = vmatprep.subr.bf16.mxu1 %v5098_v3 }
 0xe11   :  { %4842 = vmatpush3.bf16.msra.mxu1 %v4841_v9 }
 0xe12   :  { %4843 = vmatprep.subr.bf16.mxu1 %v5098_v3 }
 0xedf   :  { %v4659_v54 = vpop.f32.mrb[28].mxu1 }
 0xee0   :  { %v3757_v30 = vpop.f32.mrb[29].mxu1  ;;  %v3767_v62 = vmax.f32 %v4659_v54, 0.0  ;;  %v4000_v54 = vld [vmem:[%s5892_s14 + $0x50] sm:$0xff] }
 0xee1   :  { %v3766_v60 = vmax.f32 %v3757_v30, 0.0  ;;  %v4001_v30 = vld [vmem:[%s5892_s14 + $0x58] sm:$0xff] }
 0xee3   :  { %4676 = vmatprep.mubr.msk.f32.mxu0 %vm1926_vm3, %v3766_v60  ;;  %v4859_v60 = vpack.c.bf16 %v4001_v30, %v4000_v54 }
 0xee4   :  { %4677 = vmatmul.mubr.msk.f32.vlgmr.msra.gmra.mrb[32].mxu0 %vm1926_vm3, %v3767_v62  ;;  %v4002_v62 = vld [vmem:[%s5892_s14 + $0x60] sm:$0xff] }
 0xfb7   :  { %v4678_v41 = vpop.f32.mrb[32].mxu0 }
 0xfb8   :  { %v3859_v63 = vadd.f32 %v4678_v41, %v5747_v22  ;;  %v3849_v4 = vpop.f32.mrb[33].mxu0  ;;  %v4003_v41 = vld [vmem:[%s5892_s14 + $0x68] sm:$0xff] }
 0xfb9   :  { %v3858_v5 = vadd.f32 %v3849_v4, %v5750_v26  ;;  %v4004_v4 = vld [vmem:[%s5892_s14 + $0x70] sm:$0xff] }
 0xfba   :  { %v3862_v6 = vmul.f32 %v3859_v63, %v3859_v63 }
 0xfbb   :  { %v3861_v7 = vmul.f32 %v3858_v5, %v3858_v5 }
 0xfbc   :  { %v3866_v8 = vsel %vm122_vm0, %v3862_v6, 0.0 }
 0xfbd   :  { %3867 = vadd.xlane.f32.xlu1 %v3866_v8  ;;  %v3863_v58 = vsel %vm122_vm0, %v3861_v7, 0.0  ;;  %v4201_v7 = vld [vmem:[%s5891_s13] ss:$0 sm:$0xff] }
 0xfbe   :  { %3864 = vadd.xlane.f32.xlu0 %v3863_v58 }
0x104a   :  { %v3868_v14 = vpop.xlane.xlu1 %3867 }
0x104b   :  { %v3870_v15 = vmul.f32 0.03125, %v3868_v14  ;;  %v3865_v17 = vpop.xlane.xlu0 %3864 }
0x104c   :  { %v3869_v19 = vmul.f32 0.03125, %v3865_v17 }
0x104d   :  { %v3872_v20 = vadd.f32 1e-06, %v3870_v15 }
0x104e   :  { %v3871_v0 = vadd.f32 1e-06, %v3869_v19 }
0x104f   :  { %4983 = vrsqrt.f32 %v3872_v20 }
0x1050   :  { %4985 = vrsqrt.f32 %v3871_v0 }
0x1059   :  { %v4984_v22 = vpop.eup %4983 }
0x105a   :  { %v4986_v26 = vpop.eup %4985  ;;  %v3876_v27 = vmul.f32 %v4984_v22, %v3859_v63  ;;  %v4862_v63 = vpack.c.bf16 %v4003_v41, %v4002_v62 }
0x105b   :  { %v3875_v28 = vmul.f32 %v4986_v26, %v3858_v5  ;;  %v4005_v5 = vld [vmem:[%s5892_s14 + $0x78] sm:$0xff] }
0x105c   :  { %v3884_v31 = vmul.f32 %v4200_v24, %v3876_v27  ;;  %v4865_v6 = vpack.c.bf16 %v4005_v5, %v4004_v4 }
0x105d   :  { %v3883_v32 = vmul.f32 %v4200_v24, %v3875_v28 }
0x105e   :  { %v3892_v33 = vsel %vm122_vm0, %v3884_v31, 0.0 }
0x105f   :  { %v3885_v34 = vsel %vm122_vm0, %v3883_v32, 0.0  ;;  %v3893_v23 = vrot.slane %v3892_v33, 4 }
0x1060   :  { %v3886_v35 = vrot.slane %v3885_v34, 4 }
0x1061   :  { %v3894_v36 = vadd.f32 %v3893_v23, %v3892_v33 }
0x1062   :  { %v3887_v37 = vadd.f32 %v3886_v35, %v3885_v34 }
0x1063   :  { %v3895_v25 = vrot.slane %v3894_v36, 2 }
0x1064   :  { %v3888_v53 = vrot.slane %v3887_v37, 2 }
0x1065   :  { %v3896_v39 = vadd.f32 %v3895_v25, %v3894_v36 }
0x1066   :  { %v3889_v40 = vadd.f32 %v3888_v53, %v3887_v37 }
0x1067   :  { %v3897_v42 = vrot.slane %v3896_v39, 1 }
0x1068   :  { %v3890_v43 = vrot.slane %v3889_v40, 1 }
0x1069   :  { %v3898_v2 = vadd.f32 %v3897_v42, %v3896_v39 }
0x106a   :  { %v3891_v45 = vadd.f32 %v3890_v43, %v3889_v40 }
0x106b   :  { %v3901_v46 = vmul.f32 0.125, %v3898_v2 }
0x106c   :  { %v3900_v1 = vmul.f32 0.125, %v3891_v45 }
0x106e   :  { %v3916_v49 = vsel %vm3915_vm4, %v3901_v46, %v3900_v1 }
0x106f   :  { %4688 = vmatmul.mubr.msk.f32.vlgmr.msra.gmra.mrb[30].mxu1 %vm122_vm0, %v3916_v49 }
0x1070   :  { %4845 = vmatpush3.bf16.msra.mxu1 %v4844_v48  ;;  %4722 = vmatprep.mubr.msk.f32.mxu1 %vm5096_vm1, %v5095_v38  ;;  %v3997_v38 = vld [vmem:[%s5892_s14 + $0x38] sm:$0xff] }
0x1071   :  { %4846 = vmatprep.subr.bf16.mxu1 %v5098_v3  ;;  %v4853_v56 = vpack.c.bf16 %v3997_v38, %v3996_v55 }
0x1074   :  { %4848 = vmatpush3.bf16.msra.mxu1 %v4847_v50 }
0x1075   :  { %4849 = vmatprep.subr.bf16.mxu1 %v5098_v3 }
0x1078   :  { %4851 = vmatpush3.bf16.msra.mxu1 %v4850_v52 }
0x1079   :  { %4852 = vmatprep.subr.bf16.mxu1 %v5098_v3 }
0x107c   :  { %4854 = vmatpush3.bf16.msra.mxu1 %v4853_v56 }
0x107d   :  { %4855 = vmatprep.subr.bf16.mxu1 %v5098_v3 }
0x1080   :  { %4857 = vmatpush3.bf16.msra.mxu1 %v4856_v59 }
0x1081   :  { %4858 = vmatprep.subr.bf16.mxu1 %v5098_v3 }
0x1084   :  { %4860 = vmatpush3.bf16.msra.mxu1 %v4859_v60 }
0x1085   :  { %4861 = vmatprep.subr.bf16.mxu1 %v5098_v3 }
0x1088   :  { %4863 = vmatpush3.bf16.msra.mxu1 %v4862_v63 }
0x1089   :  { %4864 = vmatprep.subr.bf16.mxu1 %v5098_v3 }
0x108c   :  { %4866 = vmatpush3.bf16.msra.mxu1 %v4865_v6 }
0x1142   :  { %v3985_v8 = vpop.f32.mrb[30].mxu1 }
0x1143   :  { %v3986_v58 = vadd.f32 %v4201_v7, %v3985_v8  ;;  %v4689_v12 = vpop.f32.mrb[31].mxu1 }
0x1145   :  { %4987 = vtanh.f32 %v3986_v58 }
0x114f   :  { %v4988_v13 = vpop.eup %4987 }
0x1150   :  { %4723 = vmatmul.mubr.f32.vlgmr.msra.gmra.mrb[32].mxu1 %v4988_v13 }
0x1223   :  { %v4079_v16 = vpop.f32.mrb[32].mxu1 }
0x1224   :  { %v4080_v61 = vadd.f32 %v4203_v47, %v4079_v16  ;;  %v4724_v9 = vpop.f32.mrb[33].mxu1 }
0x1226   :  { %v4204_v14 = vmul.f32 -1.442695, %v4080_v61 }
0x1228   :  { %4989 = vpow2.f32 %v4204_v14 }
0x1232   :  { %v4990_v15 = vpop.eup %4989 }
0x1233   :  { %v4086_v17 = vadd.f32 1.0, %v4990_v15 }
0x1235   :  { %4991 = vrcp.f32 %v4086_v17 }
0x123f   :  { %v4992_v3 = vpop.eup %4991 }
0x1240   :  { %4090 = vst.msk [vmem:[%s5894_s16] sm:$0x3] %vm4089_vm5, %v4992_v3 }
0x1241   :  { %4095 = vsyncpa [#allocation4], 1 }
0x1242   :  { %4096 = vsyncpa [#allocation6], 1 }
0x1243   :  { %4097 = vsyncpa [#allocation9], 1 }

</bundles_post_ra>
